<compile_context>
chip_gen: v6e
topology: v6e:2x2x1
jax: 0.10.0
libtpu: 0.0.40
codegen_flags: <defaults>
</compile_context>

<pallas_src>
import math

import jax
import jax.numpy as jnp
from jax import lax
from jax.experimental import pallas as pl
from jax.experimental.pallas import tpu as pltpu


def _pick_m_tile(M):
    """Rows-per-tile: whole M when small, else a multiple-of-8 divisor <= 512."""
    if M <= 256 or M % 8 != 0:
        return M
    for cand in range(min(512, M), 7, -8):
        if M % cand == 0:
            return cand
    return M


# --------------------------- fused decode kernel -----------------------------
def _make_forecast_kernel(T0, steps, Mt, H, T_max, out_pad):
    scale = 1.0 / math.sqrt(H)
    T_out = steps + 1

    def kernel(rnn_h_ref, z_last_ref, pe_ref, pe_kv_ref,
               w_i_ref, w_h_ref, b_i_ref, b_h_ref,        # packed GRU params
               w_qkv_ref, b_qkv_ref, w_o_ref, b_o_ref,    # packed attention params
               fc_w_ref, fc_b_ref,                        # forecast_fc (lane padded)
               out_ref,                                   # [T_out, Mt, out_pad]
               kv_ref, pred_ref):                         # VMEM scratch
        # ---- hoist weights (bf16) and pre-broadcast biases (f32) once ----
        w_i_m, w_h_m = w_i_ref[...], w_h_ref[...]
        w_qkv_m, w_o_m = w_qkv_ref[...], w_o_ref[...]
        b_i_m = jnp.broadcast_to(b_i_ref[...], (Mt, 3 * H))
        b_h_m = jnp.broadcast_to(b_h_ref[...], (Mt, 3 * H))
        b_qkv_m = jnp.broadcast_to(b_qkv_ref[...], (Mt, 3 * H))
        b_o_m = jnp.broadcast_to(b_o_ref[...], (Mt, H))
        pe_kv_m = pe_kv_ref[...]                          # [T_max, 2H]  (= pe @ W_kv)

        # zero the K/V cache so masked (not-yet-written) rows stay finite
        kv_ref[...] = jnp.zeros_like(kv_ref)

        # base K/V of the initial RNN_H rows: ONE matmul at init (no PE yet; the
        # cumulative PE contribution is added analytically via counts below)
        rnn0 = rnn_h_ref[...].reshape(T0 * Mt, H)
        kv0 = (jnp.dot(rnn0.astype(jnp.bfloat16), w_qkv_m[:, H:],
                       preferred_element_type=jnp.float32) + b_qkv_m[0:1, H:])
        kv_ref[0:T0] = kv0.reshape(T0, Mt, 2 * H)

        z0 = z_last_ref[...]                              # Z[-1] -> first prediction
        pred_ref[0:1] = z0.reshape(1, Mt, H)
        h0 = rnn_h_ref[T0 - 1]                            # RNN_H[-1] (no PE at step 0)

        row_idx = lax.broadcasted_iota(jnp.int32, (T_max, 1, 1), 0)
        row_idx2 = lax.broadcasted_iota(jnp.int32, (T_max, Mt), 0)

        def step(s, carry):
            cur, h_prev = carry
            t = T0 + s                                    # row being appended

            # ------------------- GRU cell (packed gates r,z,n) -------------------
            gi = jnp.dot(cur.astype(jnp.bfloat16), w_i_m,
                         preferred_element_type=jnp.float32) + b_i_m
            gh = jnp.dot(h_prev.astype(jnp.bfloat16), w_h_m,
                         preferred_element_type=jnp.float32) + b_h_m
            r = jax.nn.sigmoid(gi[:, 0:H] + gh[:, 0:H])
            zg = jax.nn.sigmoid(gi[:, H:2 * H] + gh[:, H:2 * H])
            n = jnp.tanh(gi[:, 2 * H:3 * H] + r * gh[:, 2 * H:3 * H])
            g = (1.0 - zg) * n + zg * h_prev              # raw GRU output [Mt, H]

            # ----- q, k_new, v_new from ONE matmul; append base K/V to cache -----
            qkv = jnp.dot(g.astype(jnp.bfloat16), w_qkv_m,
                          preferred_element_type=jnp.float32) + b_qkv_m
            q = qkv[:, 0:H]
            kv_ref[pl.ds(t, 1)] = qkv[:, H:3 * H].reshape(1, Mt, 2 * H)

            # cumulative PE via linearity:  K/V_eff = base + count * (pe @ W_kv)
            # count(row, s) = s+1 - max(row - T0, 0)  (exact torch semantics)
            counts = ((s + 1) - jnp.maximum(row_idx - T0, 0)).astype(jnp.float32)
            kv_eff = kv_ref[...] + counts * pe_kv_m[:, None, :]   # [T_max, Mt, 2H]
            k_eff = kv_eff[:, :, 0:H]
            v_eff = kv_eff[:, :, H:2 * H]

            # ---------------- single-head attention over valid rows ----------------
            sc = jnp.sum(q[None, :, :] * k_eff, axis=-1) * scale  # [T_max, Mt]
            sc = jnp.where(row_idx2 <= t, sc, jnp.float32(-1e30))
            sc = sc - jnp.max(sc, axis=0, keepdims=True)
            e = jnp.exp(sc)
            p = e * pl.reciprocal(jnp.sum(e, axis=0, keepdims=True), approx=True)
            ctx = jnp.sum(p[:, :, None] * v_eff, axis=0)          # [Mt, H]

            z_new = jnp.dot(ctx.astype(jnp.bfloat16), w_o_m,
                            preferred_element_type=jnp.float32) + b_o_m
            pred_ref[pl.ds(s + 1, 1)] = z_new.reshape(1, Mt, H)

            # next step's RNN_H[-1] = this row after exactly ONE PE application
            h_next = g + pe_ref[pl.ds(t, 1), :]
            return (z_new, h_next)

        lax.fori_loop(0, steps, step, (z0, h0), unroll=(steps <= 8))

        # -------- forecast_fc folded in: one matmul, lane-dense padded store --------
        pred = pred_ref[...].reshape(T_out * Mt, H)
        out = (jnp.dot(pred.astype(jnp.bfloat16), fc_w_ref[...],
                       preferred_element_type=jnp.float32) + fc_b_ref[...])
        out_ref[...] = out.reshape(T_out, Mt, out_pad).astype(out_ref.dtype)

    return kernel


# ------------------------------ Forecast module ------------------------------
class Forecast:
    """JAX/Pallas port of models/inherent_block/forecast.py::Forecast.

    The torch forward receives transformer_layer / rnn_layer / pe as callables;
    here they are realized inside ONE fused Pallas kernel from explicit packed
    parameter dicts (GRUCell math, single-head attention, additive PE table).
    """

    def __init__(self, hidden_dim, fk_dim, key, *, out_seq_length, gap):
        self.hidden_dim = hidden_dim
        self.fk_dim = fk_dim
        self.output_seq_len = out_seq_length
        self.gap = gap
        k1, k2 = jax.random.split(key)
        self.fc_w = 0.1 * jax.random.normal(k1, (hidden_dim, fk_dim), jnp.float32)
        self.fc_b = 0.1 * jax.random.normal(k2, (1, fk_dim), jnp.float32)

    def __call__(self, X, RNN_H, Z, attn_params, gru_params, pe_table):
        B, _, N, D = X.shape             # D must equal hidden_dim (torch reshape)
        T0, M, H = RNN_H.shape
        steps = int(self.output_seq_len / self.gap) - 1
        T_out = steps + 1
        T_max = T0 + steps
        Mt = _pick_m_tile(M)
        assert M % Mt == 0
        out_pad = ((self.fk_dim + 127) // 128) * 128       # lane-dense output width

        bf = jnp.bfloat16
        f32 = jnp.float32

        # pack attention q/k/v into one [H, 3H] weight, biases into [1, 3H]
        w_qkv = jnp.concatenate([attn_params["w_q"], attn_params["w_kv"]], axis=1)
        b_qkv = jnp.concatenate([attn_params["b_q"], attn_params["b_kv"]], axis=1)

        if pe_table is None:
            pe = jnp.zeros((T_max, H), f32)
        else:
            pe = pe_table[:T_max].astype(f32)
        pe_kv = pe @ attn_params["w_kv"].astype(f32)       # [T_max, 2H], no bias

        fc_w_pad = jnp.zeros((H, out_pad), f32).at[:, :self.fk_dim].set(self.fc_w)
        fc_b_pad = jnp.zeros((1, out_pad), f32).at[:, :self.fk_dim].set(self.fc_b)

        args = (RNN_H.astype(f32), Z[-1].astype(f32), pe, pe_kv,
                gru_params["w_i"].astype(bf), gru_params["w_h"].astype(bf),
                gru_params["b_i"].astype(f32), gru_params["b_h"].astype(f32),
                w_qkv.astype(bf), b_qkv.astype(f32),
                attn_params["w_o"].astype(bf), attn_params["b_o"].astype(f32),
                fc_w_pad.astype(bf), fc_b_pad)

        def _full2(i):
            return (0, 0)

        in_specs = [
            pl.BlockSpec((T0, Mt, H), lambda i: (0, i, 0)),     # RNN_H  (M-tiled)
            pl.BlockSpec((Mt, H), lambda i: (i, 0)),            # Z[-1]  (M-tiled)
            pl.BlockSpec((T_max, H), _full2),                   # pe table
            pl.BlockSpec((T_max, 2 * H), _full2),               # pe @ W_kv
            pl.BlockSpec((H, 3 * H), _full2),                   # w_i
            pl.BlockSpec((H, 3 * H), _full2),                   # w_h
            pl.BlockSpec((1, 3 * H), _full2),                   # b_i
            pl.BlockSpec((1, 3 * H), _full2),                   # b_h
            pl.BlockSpec((H, 3 * H), _full2),                   # w_qkv
            pl.BlockSpec((1, 3 * H), _full2),                   # b_qkv
            pl.BlockSpec((H, H), _full2),                       # w_o
            pl.BlockSpec((1, H), _full2),                       # b_o
            pl.BlockSpec((H, out_pad), _full2),                 # fc_w (lane padded)
            pl.BlockSpec((1, out_pad), _full2),                 # fc_b (lane padded)
        ]

        kernel = _make_forecast_kernel(T0, steps, Mt, H, T_max, out_pad)
        out3 = pl.pallas_call(
            kernel,
            out_shape=jax.ShapeDtypeStruct((T_out, M, out_pad), jnp.float32),
            grid=(M // Mt,),
            in_specs=in_specs,
            out_specs=pl.BlockSpec((T_out, Mt, out_pad), lambda i: (0, i, 0)),
            scratch_shapes=[pltpu.VMEM((T_max, Mt, 2 * H), jnp.float32),   # K/V cache
                            pltpu.VMEM((T_out, Mt, H), jnp.float32)],      # predictions
            compiler_params=pltpu.CompilerParams(
                dimension_semantics=("parallel",),
                vmem_limit_bytes=48 * 1024 * 1024),
        )(*args)

        # [T_out, M, out_pad] -> [T_out, B, N, fk] -> [B, T_out, N, fk]
        out = out3[:, :, :self.fk_dim].reshape(T_out, B, N, self.fk_dim)
        return jnp.transpose(out, (1, 0, 2, 3))


# ------------------------------ parameter init -------------------------------
def make_gru_params(key, H):
    ks = jax.random.split(key, 4)
    nrm = lambda k, shp: 0.1 * jax.random.normal(k, shp, jnp.float32)
    # packed gate order (r, z, n), already transposed for x @ W
    return {"w_i": nrm(ks[0], (H, 3 * H)), "w_h": nrm(ks[1], (H, 3 * H)),
            "b_i": nrm(ks[2], (1, 3 * H)), "b_h": nrm(ks[3], (1, 3 * H))}


def make_attn_params(key, H):
    ks = jax.random.split(key, 6)
    nrm = lambda k, shp: 0.1 * jax.random.normal(k, shp, jnp.float32)
    return {"w_q": nrm(ks[0], (H, H)), "w_kv": nrm(ks[1], (H, 2 * H)),
            "w_o": nrm(ks[2], (H, H)),
            "b_q": nrm(ks[3], (1, H)), "b_kv": nrm(ks[4], (1, 2 * H)),
            "b_o": nrm(ks[5], (1, H))}


def make_pe_table(T_max, H):
    pos = jnp.arange(T_max, dtype=jnp.float32)[:, None]
    i = jnp.arange(0, H, 2, dtype=jnp.float32)
    div = jnp.exp(-math.log(10000.0) * i / H)
    tab = jnp.zeros((T_max, H), jnp.float32)
    tab = tab.at[:, 0::2].set(jnp.sin(pos * div))
    tab = tab.at[:, 1::2].set(jnp.cos(pos * div))
    return tab


# --------------------------- pure-JAX reference (f32) ------------------------
def forecast_reference(RNN_H, Z, attn_p, gru_p, pe_tab, fc_w, fc_b, steps):
    T0, M, H = RNN_H.shape
    buf = RNN_H
    preds = [Z[-1]]
    w_i, w_h, b_i, b_h = gru_p["w_i"], gru_p["w_h"], gru_p["b_i"], gru_p["b_h"]
    w_q, w_kv, w_o = attn_p["w_q"], attn_p["w_kv"], attn_p["w_o"]
    b_q, b_kv, b_o = attn_p["b_q"], attn_p["b_kv"], attn_p["b_o"]
    for _ in range(steps):
        cur, h_prev = preds[-1], buf[-1]
        gi = cur @ w_i + b_i
        gh = h_prev @ w_h + b_h
        r = jax.nn.sigmoid(gi[:, :H] + gh[:, :H])
        zg = jax.nn.sigmoid(gi[:, H:2 * H] + gh[:, H:2 * H])
        n = jnp.tanh(gi[:, 2 * H:] + r * gh[:, 2 * H:])
        g = (1.0 - zg) * n + zg * h_prev
        buf = jnp.concatenate([buf, g[None]], axis=0)
        buf = buf + pe_tab[:buf.shape[0], None, :]          # cumulative PE
        q = g @ w_q + b_q
        k = buf @ w_kv[:, :H] + b_kv[:, :H]
        v = buf @ w_kv[:, H:] + b_kv[:, H:]
        sc = jnp.einsum("mh,tmh->tm", q, k) / math.sqrt(H)
        p = jax.nn.softmax(sc, axis=0)
        ctx = jnp.einsum("tm,tmh->mh", p, v)
        preds.append(ctx @ w_o + b_o)
    pred = jnp.stack(preds, axis=0)                         # [T_out, M, H]
    return pred @ fc_w + fc_b                               # [T_out, M, fk]


# ----------------------------------- main ------------------------------------
if __name__ == "__main__":
    B, T_in, N, H = 2, 3, 4, 32       # num_feat == hidden_dim (required by the reshape)
    fk_dim = 12
    out_seq_length, gap = 8, 2        # -> 3 decode steps, T_out = 4
    T0 = 3                            # length of incoming RNN_H / Z
    M = B * N
    steps = out_seq_length // gap - 1
    T_max = T0 + steps

    key = jax.random.PRNGKey(0)
    kx, kh, kz, kgru, kattn, kfc = jax.random.split(key, 6)

    X = 0.1 * jax.random.normal(kx, (B, T_in, N, H), jnp.float32)
    RNN_H = 0.1 * jax.random.normal(kh, (T0, M, H), jnp.float32)
    Z = 0.1 * jax.random.normal(kz, (T0, M, H), jnp.float32)

    gru_p = make_gru_params(kgru, H)
    attn_p = make_attn_params(kattn, H)
    pe_table = make_pe_table(T_max, H)

    model = Forecast(H, fk_dim, kfc, out_seq_length=out_seq_length, gap=gap)
    forward = jax.jit(model)          # single fused kernel + tiny pre/post glue
    out = forward(X, RNN_H, Z, attn_p, gru_p, pe_table)
    out = jax.block_until_ready(out)

    assert out.shape == (B, out_seq_length // gap, N, fk_dim), out.shape
    assert bool(jnp.all(jnp.isfinite(out)))

    # correctness vs f32 pure-JAX reference (bf16 MXU + approx reciprocal => loose tol)
    ref = forecast_reference(RNN_H, Z, attn_p, gru_p, pe_table,
                             model.fc_w, model.fc_b, steps)
    ref = jnp.transpose(ref.reshape(steps + 1, B, N, fk_dim), (1, 0, 2, 3))
    max_err = float(jnp.max(jnp.abs(out - ref)))
    assert max_err < 1e-1, f"max abs error vs reference: {max_err}"

    print("KERNEL_OK")
</pallas_src>

<mosaic_0001>
module attributes {stable_mosaic.version = 11 : i64} {
  func.func @kernel(%arg0: i32, %arg1: memref<3x8x32xf32, #tpu.memory_space<vmem>>, %arg2: memref<8x32xf32, #tpu.memory_space<vmem>>, %arg3: memref<6x32xf32, #tpu.memory_space<vmem>>, %arg4: memref<6x64xf32, #tpu.memory_space<vmem>>, %arg5: memref<32x96xbf16, #tpu.memory_space<vmem>>, %arg6: memref<32x96xbf16, #tpu.memory_space<vmem>>, %arg7: memref<1x96xf32, #tpu.memory_space<vmem>>, %arg8: memref<1x96xf32, #tpu.memory_space<vmem>>, %arg9: memref<32x96xbf16, #tpu.memory_space<vmem>>, %arg10: memref<1x96xf32, #tpu.memory_space<vmem>>, %arg11: memref<32x32xbf16, #tpu.memory_space<vmem>>, %arg12: memref<1x32xf32, #tpu.memory_space<vmem>>, %arg13: memref<32x128xbf16, #tpu.memory_space<vmem>>, %arg14: memref<1x128xf32, #tpu.memory_space<vmem>>, %arg15: memref<4x8x128xf32, #tpu.memory_space<vmem>>, %arg16: memref<6x8x64xf32, #tpu.memory_space<vmem>>, %arg17: memref<4x8x32xf32, #tpu.memory_space<vmem>>) attributes {dimension_semantics = [#tpu.dimension_semantics<parallel>], iteration_bounds = array<i64: 1>, scalar_prefetch = 0 : i64, scratch_operands = 2 : i64, tpu.core_type = #tpu.core_type<tc>, window_params = [{transform_indices = @transform_0, window_bounds = array<i64: 3, 8, 32>}, {transform_indices = @transform_1, window_bounds = array<i64: 8, 32>}, {pipeline_mode = #tpu.pipeline_mode<synchronous>, transform_indices = @transform_2, window_bounds = array<i64: 6, 32>}, {pipeline_mode = #tpu.pipeline_mode<synchronous>, transform_indices = @transform_3, window_bounds = array<i64: 6, 64>}, {pipeline_mode = #tpu.pipeline_mode<synchronous>, transform_indices = @transform_4, window_bounds = array<i64: 32, 96>}, {pipeline_mode = #tpu.pipeline_mode<synchronous>, transform_indices = @transform_5, window_bounds = array<i64: 32, 96>}, {pipeline_mode = #tpu.pipeline_mode<synchronous>, transform_indices = @transform_6, window_bounds = array<i64: 1, 96>}, {pipeline_mode = #tpu.pipeline_mode<synchronous>, transform_indices = @transform_7, window_bounds = array<i64: 1, 96>}, {pipeline_mode = #tpu.pipeline_mode<synchronous>, transform_indices = @transform_8, window_bounds = array<i64: 32, 96>}, {pipeline_mode = #tpu.pipeline_mode<synchronous>, transform_indices = @transform_9, window_bounds = array<i64: 1, 96>}, {pipeline_mode = #tpu.pipeline_mode<synchronous>, transform_indices = @transform_10, window_bounds = array<i64: 32, 32>}, {pipeline_mode = #tpu.pipeline_mode<synchronous>, transform_indices = @transform_11, window_bounds = array<i64: 1, 32>}, {pipeline_mode = #tpu.pipeline_mode<synchronous>, transform_indices = @transform_12, window_bounds = array<i64: 32, 128>}, {pipeline_mode = #tpu.pipeline_mode<synchronous>, transform_indices = @transform_13, window_bounds = array<i64: 1, 128>}, {transform_indices = @transform_14, window_bounds = array<i64: 4, 8, 128>}]} {
    %c0 = arith.constant 0 : index
    %c0_0 = arith.constant 0 : index
    %0 = vector.load %arg5[%c0, %c0_0] : memref<32x96xbf16, #tpu.memory_space<vmem>>, vector<32x96xbf16>
    %c0_1 = arith.constant 0 : index
    %c0_2 = arith.constant 0 : index
    %1 = vector.load %arg6[%c0_1, %c0_2] : memref<32x96xbf16, #tpu.memory_space<vmem>>, vector<32x96xbf16>
    %c0_3 = arith.constant 0 : index
    %c0_4 = arith.constant 0 : index
    %2 = vector.load %arg9[%c0_3, %c0_4] : memref<32x96xbf16, #tpu.memory_space<vmem>>, vector<32x96xbf16>
    %c0_5 = arith.constant 0 : index
    %c0_6 = arith.constant 0 : index
    %3 = vector.load %arg11[%c0_5, %c0_6] : memref<32x32xbf16, #tpu.memory_space<vmem>>, vector<32x32xbf16>
    %c0_7 = arith.constant 0 : index
    %c0_8 = arith.constant 0 : index
    %4 = vector.load %arg7[%c0_7, %c0_8] : memref<1x96xf32, #tpu.memory_space<vmem>>, vector<1x96xf32>
    %5 = vector.shape_cast %4 : vector<1x96xf32> to vector<1x96xf32>
    %6 = vector.broadcast %5 : vector<1x96xf32> to vector<8x96xf32>
    %c0_9 = arith.constant 0 : index
    %c0_10 = arith.constant 0 : index
    %7 = vector.load %arg8[%c0_9, %c0_10] : memref<1x96xf32, #tpu.memory_space<vmem>>, vector<1x96xf32>
    %8 = vector.shape_cast %7 : vector<1x96xf32> to vector<1x96xf32>
    %9 = vector.broadcast %8 : vector<1x96xf32> to vector<8x96xf32>
    %c0_11 = arith.constant 0 : index
    %c0_12 = arith.constant 0 : index
    %10 = vector.load %arg10[%c0_11, %c0_12] : memref<1x96xf32, #tpu.memory_space<vmem>>, vector<1x96xf32>
    %11 = vector.shape_cast %10 : vector<1x96xf32> to vector<1x96xf32>
    %12 = vector.broadcast %11 : vector<1x96xf32> to vector<8x96xf32>
    %c0_13 = arith.constant 0 : index
    %c0_14 = arith.constant 0 : index
    %13 = vector.load %arg12[%c0_13, %c0_14] : memref<1x32xf32, #tpu.memory_space<vmem>>, vector<1x32xf32>
    %14 = vector.shape_cast %13 : vector<1x32xf32> to vector<1x32xf32>
    %15 = vector.broadcast %14 : vector<1x32xf32> to vector<8x32xf32>
    %c0_15 = arith.constant 0 : index
    %c0_16 = arith.constant 0 : index
    %16 = vector.load %arg4[%c0_15, %c0_16] : memref<6x64xf32, #tpu.memory_space<vmem>>, vector<6x64xf32>
    %cst = arith.constant 0.000000e+00 : f32
    %17 = vector.broadcast %cst : f32 to vector<6x8x64xf32>
    %c0_17 = arith.constant 0 : index
    %c0_18 = arith.constant 0 : index
    %c0_19 = arith.constant 0 : index
    %18 = vector.load %arg16[%c0_17, %c0_18, %c0_19] : memref<6x8x64xf32, #tpu.memory_space<vmem>>, vector<6x8x64xf32>
    tpu.vector_store %arg16[%c0_17, %c0_18, %c0_19], %17 {strides = array<i32>} : memref<6x8x64xf32, #tpu.memory_space<vmem>>, vector<6x8x64xf32>,
    %c0_20 = arith.constant 0 : index
    %c0_21 = arith.constant 0 : index
    %c0_22 = arith.constant 0 : index
    %19 = vector.load %arg1[%c0_20, %c0_21, %c0_22] : memref<3x8x32xf32, #tpu.memory_space<vmem>>, vector<3x8x32xf32>
    %20 = vector.shape_cast %19 : vector<3x8x32xf32> to vector<24x32xf32>
    %21 = arith.truncf %20 : vector<24x32xf32> to vector<24x32xbf16>
    %22 = vector.extract_strided_slice %2 {offsets = [0, 32], sizes = [32, 64], strides = [1, 1]} : vector<32x96xbf16> to vector<32x64xbf16>
    %cst_23 = arith.constant dense<0.000000e+00> : vector<24x64xf32>
    %23 = tpu.matmul %21, %22, %cst_23 {dimension_numbers = #tpu.dot_dimension_numbers<[1], [0], [0], [1], [0, 0, 1, 1], [], []>} : vector<24x32xbf16>, vector<32x64xbf16>, vector<24x64xf32> -> vector<24x64xf32>
    %24 = vector.extract_strided_slice %12 {offsets = [0, 32], sizes = [1, 64], strides = [1, 1]} : vector<8x96xf32> to vector<1x64xf32>
    %25 = vector.broadcast %24 : vector<1x64xf32> to vector<24x64xf32>
    %26 = arith.addf %23, %25 : vector<24x64xf32>
    %27 = vector.shape_cast %26 : vector<24x64xf32> to vector<3x8x64xf32>
    %c0_24 = arith.constant 0 : index
    %c0_25 = arith.constant 0 : index
    %c0_26 = arith.constant 0 : index
    %28 = vector.load %arg16[%c0_24, %c0_25, %c0_26] : memref<6x8x64xf32, #tpu.memory_space<vmem>>, vector<3x8x64xf32>
    tpu.vector_store %arg16[%c0_24, %c0_25, %c0_26], %27 {strides = array<i32>} : memref<6x8x64xf32, #tpu.memory_space<vmem>>, vector<3x8x64xf32>,
    %c0_27 = arith.constant 0 : index
    %c0_28 = arith.constant 0 : index
    %29 = vector.load %arg2[%c0_27, %c0_28] : memref<8x32xf32, #tpu.memory_space<vmem>>, vector<8x32xf32>
    %30 = vector.shape_cast %29 : vector<8x32xf32> to vector<1x8x32xf32>
    %c0_29 = arith.constant 0 : index
    %c0_30 = arith.constant 0 : index
    %c0_31 = arith.constant 0 : index
    %31 = vector.load %arg17[%c0_29, %c0_30, %c0_31] : memref<4x8x32xf32, #tpu.memory_space<vmem>>, vector<1x8x32xf32>
    tpu.vector_store %arg17[%c0_29, %c0_30, %c0_31], %30 {strides = array<i32>} : memref<4x8x32xf32, #tpu.memory_space<vmem>>, vector<1x8x32xf32>,
    %c2 = arith.constant 2 : index
    %c0_32 = arith.constant 0 : index
    %c0_33 = arith.constant 0 : index
    %32 = vector.load %arg1[%c2, %c0_32, %c0_33] : memref<3x8x32xf32, #tpu.memory_space<vmem>>, vector<1x8x32xf32>
    %33 = vector.shape_cast %32 : vector<1x8x32xf32> to vector<8x32xf32>
    %34 = tpu.iota {dimensions = array<i32: 0>} : vector<6x1x1xi32>
    %35 = tpu.iota {dimensions = array<i32: 0>} : vector<6x8xi32>
    %c0_i32 = arith.constant 0 : i32
    %c3_i32 = arith.constant 3 : i32
    %36 = arith.addi %c3_i32, %c0_i32 : i32
    %37 = arith.truncf %29 : vector<8x32xf32> to vector<8x32xbf16>
    %cst_34 = arith.constant dense<0.000000e+00> : vector<8x96xf32>
    %38 = tpu.matmul %37, %0, %cst_34 {dimension_numbers = #tpu.dot_dimension_numbers<[1], [0], [0], [1], [0, 0, 1, 1], [], []>} : vector<8x32xbf16>, vector<32x96xbf16>, vector<8x96xf32> -> vector<8x96xf32>
    %39 = arith.addf %38, %6 : vector<8x96xf32>
    %40 = arith.truncf %33 : vector<8x32xf32> to vector<8x32xbf16>
    %cst_35 = arith.constant dense<0.000000e+00> : vector<8x96xf32>
    %41 = tpu.matmul %40, %1, %cst_35 {dimension_numbers = #tpu.dot_dimension_numbers<[1], [0], [0], [1], [0, 0, 1, 1], [], []>} : vector<8x32xbf16>, vector<32x96xbf16>, vector<8x96xf32> -> vector<8x96xf32>
    %42 = arith.addf %41, %9 : vector<8x96xf32>
    %43 = vector.extract_strided_slice %39 {offsets = [0, 0], sizes = [8, 32], strides = [1, 1]} : vector<8x96xf32> to vector<8x32xf32>
    %44 = vector.extract_strided_slice %42 {offsets = [0, 0], sizes = [8, 32], strides = [1, 1]} : vector<8x96xf32> to vector<8x32xf32>
    %45 = arith.addf %43, %44 : vector<8x32xf32>
    %46 = arith.negf %45 : vector<8x32xf32>
    %47 = math.exp %46 : vector<8x32xf32>
    %cst_36 = arith.constant 1.000000e+00 : f32
    %48 = vector.broadcast %cst_36 : f32 to vector<8x32xf32>
    %49 = arith.addf %48, %47 : vector<8x32xf32>
    %50 = arith.divf %48, %49 : vector<8x32xf32>
    %51 = vector.extract_strided_slice %39 {offsets = [0, 32], sizes = [8, 32], strides = [1, 1]} : vector<8x96xf32> to vector<8x32xf32>
    %52 = vector.extract_strided_slice %42 {offsets = [0, 32], sizes = [8, 32], strides = [1, 1]} : vector<8x96xf32> to vector<8x32xf32>
    %53 = arith.addf %51, %52 : vector<8x32xf32>
    %54 = arith.negf %53 : vector<8x32xf32>
    %55 = math.exp %54 : vector<8x32xf32>
    %cst_37 = arith.constant 1.000000e+00 : f32
    %56 = vector.broadcast %cst_37 : f32 to vector<8x32xf32>
    %57 = arith.addf %56, %55 : vector<8x32xf32>
    %58 = arith.divf %56, %57 : vector<8x32xf32>
    %59 = vector.extract_strided_slice %39 {offsets = [0, 64], sizes = [8, 32], strides = [1, 1]} : vector<8x96xf32> to vector<8x32xf32>
    %60 = vector.extract_strided_slice %42 {offsets = [0, 64], sizes = [8, 32], strides = [1, 1]} : vector<8x96xf32> to vector<8x32xf32>
    %61 = arith.mulf %50, %60 : vector<8x32xf32>
    %62 = arith.addf %59, %61 : vector<8x32xf32>
    %63 = math.tanh %62 : vector<8x32xf32>
    %cst_38 = arith.constant 1.000000e+00 : f32
    %64 = vector.broadcast %cst_38 : f32 to vector<8x32xf32>
    %65 = arith.subf %64, %58 : vector<8x32xf32>
    %66 = arith.mulf %65, %63 : vector<8x32xf32>
    %67 = arith.mulf %58, %33 : vector<8x32xf32>
    %68 = arith.addf %66, %67 : vector<8x32xf32>
    %69 = arith.truncf %68 : vector<8x32xf32> to vector<8x32xbf16>
    %cst_39 = arith.constant dense<0.000000e+00> : vector<8x96xf32>
    %70 = tpu.matmul %69, %2, %cst_39 {dimension_numbers = #tpu.dot_dimension_numbers<[1], [0], [0], [1], [0, 0, 1, 1], [], []>} : vector<8x32xbf16>, vector<32x96xbf16>, vector<8x96xf32> -> vector<8x96xf32>
    %71 = arith.addf %70, %12 : vector<8x96xf32>
    %72 = vector.extract_strided_slice %71 {offsets = [0, 0], sizes = [8, 32], strides = [1, 1]} : vector<8x96xf32> to vector<8x32xf32>
    %73 = vector.extract_strided_slice %71 {offsets = [0, 32], sizes = [8, 64], strides = [1, 1]} : vector<8x96xf32> to vector<8x64xf32>
    %74 = vector.shape_cast %73 : vector<8x64xf32> to vector<1x8x64xf32>
    %75 = arith.index_cast %36 : i32 to index
    %c0_40 = arith.constant 0 : index
    %c0_41 = arith.constant 0 : index
    %76 = vector.load %arg16[%75, %c0_40, %c0_41] : memref<6x8x64xf32, #tpu.memory_space<vmem>>, vector<1x8x64xf32>
    tpu.vector_store %arg16[%75, %c0_40, %c0_41], %74 {strides = array<i32>} : memref<6x8x64xf32, #tpu.memory_space<vmem>>, vector<1x8x64xf32>,
    %c1_i32 = arith.constant 1 : i32
    %77 = arith.addi %c0_i32, %c1_i32 : i32
    %c3_i32_42 = arith.constant 3 : i32
    %78 = vector.broadcast %c3_i32_42 : i32 to vector<6x1x1xi32>
    %79 = arith.subi %34, %78 : vector<6x1x1xi32>
    %c0_i32_43 = arith.constant 0 : i32
    %80 = vector.broadcast %c0_i32_43 : i32 to vector<6x1x1xi32>
    %81 = arith.maxsi %79, %80 : vector<6x1x1xi32>
    %82 = vector.broadcast %77 : i32 to vector<6x1x1xi32>
    %83 = arith.subi %82, %81 : vector<6x1x1xi32>
    %84 = arith.sitofp %83 : vector<6x1x1xi32> to vector<6x1x1xf32>
    %c0_44 = arith.constant 0 : index
    %c0_45 = arith.constant 0 : index
    %c0_46 = arith.constant 0 : index
    %85 = vector.load %arg16[%c0_44, %c0_45, %c0_46] : memref<6x8x64xf32, #tpu.memory_space<vmem>>, vector<6x8x64xf32>
    %86 = vector.shape_cast %16 : vector<6x64xf32> to vector<6x1x64xf32>
    %87 = vector.broadcast %84 : vector<6x1x1xf32> to vector<6x1x64xf32>
    %88 = arith.mulf %87, %86 : vector<6x1x64xf32>
    %89 = vector.broadcast %88 : vector<6x1x64xf32> to vector<6x8x64xf32>
    %90 = arith.addf %85, %89 : vector<6x8x64xf32>
    %91 = vector.extract_strided_slice %90 {offsets = [0, 0, 0], sizes = [6, 8, 32], strides = [1, 1, 1]} : vector<6x8x64xf32> to vector<6x8x32xf32>
    %92 = vector.extract_strided_slice %90 {offsets = [0, 0, 32], sizes = [6, 8, 32], strides = [1, 1, 1]} : vector<6x8x64xf32> to vector<6x8x32xf32>
    %93 = vector.shape_cast %72 : vector<8x32xf32> to vector<1x8x32xf32>
    %94 = vector.broadcast %93 : vector<1x8x32xf32> to vector<6x8x32xf32>
    %95 = arith.mulf %94, %91 : vector<6x8x32xf32>
    %cst_47 = arith.constant dense<0.000000e+00> : vector<6x8xf32>
    %96 = vector.multi_reduction <add>, %95, %cst_47 [2] : vector<6x8x32xf32> to vector<6x8xf32>
    %cst_48 = arith.constant 0.176776692 : f32
    %97 = vector.broadcast %cst_48 : f32 to vector<6x8xf32>
    %98 = arith.mulf %96, %97 : vector<6x8xf32>
    %99 = vector.broadcast %36 : i32 to vector<6x8xi32>
    %100 = arith.cmpi sle, %35, %99 : vector<6x8xi32>
    %cst_49 = arith.constant -1.000000e+30 : f32
    %101 = vector.broadcast %cst_49 : f32 to vector<6x8xf32>
    %102 = arith.select %100, %98, %101 : vector<6x8xi1>, vector<6x8xf32>
    %cst_50 = arith.constant dense<0xFF800000> : vector<8xf32>
    %103 = vector.multi_reduction <maximumf>, %102, %cst_50 [0] : vector<6x8xf32> to vector<8xf32>
    %104 = vector.shape_cast %103 : vector<8xf32> to vector<1x8xf32>
    %105 = vector.broadcast %104 : vector<1x8xf32> to vector<6x8xf32>
    %106 = arith.subf %102, %105 : vector<6x8xf32>
    %107 = math.exp %106 : vector<6x8xf32>
    %cst_51 = arith.constant dense<0.000000e+00> : vector<8xf32>
    %108 = vector.multi_reduction <add>, %107, %cst_51 [0] : vector<6x8xf32> to vector<8xf32>
    %109 = vector.shape_cast %108 : vector<8xf32> to vector<1x8xf32>
    %110 = tpu.reciprocal %109 {approx = true} : vector<1x8xf32> -> vector<1x8xf32>
    %111 = vector.broadcast %110 : vector<1x8xf32> to vector<6x8xf32>
    %112 = arith.mulf %107, %111 : vector<6x8xf32>
    %113 = vector.shape_cast %112 : vector<6x8xf32> to vector<6x8x1xf32>
    %114 = vector.broadcast %113 : vector<6x8x1xf32> to vector<6x8x32xf32>
    %115 = arith.mulf %114, %92 : vector<6x8x32xf32>
    %cst_52 = arith.constant dense<0.000000e+00> : vector<8x32xf32>
    %116 = vector.multi_reduction <add>, %115, %cst_52 [0] : vector<6x8x32xf32> to vector<8x32xf32>
    %117 = arith.truncf %116 : vector<8x32xf32> to vector<8x32xbf16>
    %cst_53 = arith.constant dense<0.000000e+00> : vector<8x32xf32>
    %118 = tpu.matmul %117, %3, %cst_53 {dimension_numbers = #tpu.dot_dimension_numbers<[1], [0], [0], [1], [0, 0, 1, 1], [], []>} : vector<8x32xbf16>, vector<32x32xbf16>, vector<8x32xf32> -> vector<8x32xf32>
    %119 = arith.addf %118, %15 : vector<8x32xf32>
    %120 = vector.shape_cast %119 : vector<8x32xf32> to vector<1x8x32xf32>
    %c1_i32_54 = arith.constant 1 : i32
    %121 = arith.addi %c0_i32, %c1_i32_54 : i32
    %122 = arith.index_cast %121 : i32 to index
    %c0_55 = arith.constant 0 : index
    %c0_56 = arith.constant 0 : index
    %123 = vector.load %arg17[%122, %c0_55, %c0_56] : memref<4x8x32xf32, #tpu.memory_space<vmem>>, vector<1x8x32xf32>
    tpu.vector_store %arg17[%122, %c0_55, %c0_56], %120 {strides = array<i32>} : memref<4x8x32xf32, #tpu.memory_space<vmem>>, vector<1x8x32xf32>,
    %124 = arith.index_cast %36 : i32 to index
    %c0_57 = arith.constant 0 : index
    %125 = vector.load %arg3[%124, %c0_57] : memref<6x32xf32, #tpu.memory_space<vmem>>, vector<1x32xf32>
    %126 = vector.broadcast %125 : vector<1x32xf32> to vector<8x32xf32>
    %127 = arith.addf %68, %126 : vector<8x32xf32>
    %c1_i32_58 = arith.constant 1 : i32
    %c3_i32_59 = arith.constant 3 : i32
    %128 = arith.addi %c3_i32_59, %c1_i32_58 : i32
    %129 = arith.truncf %119 : vector<8x32xf32> to vector<8x32xbf16>
    %cst_60 = arith.constant dense<0.000000e+00> : vector<8x96xf32>
    %130 = tpu.matmul %129, %0, %cst_60 {dimension_numbers = #tpu.dot_dimension_numbers<[1], [0], [0], [1], [0, 0, 1, 1], [], []>} : vector<8x32xbf16>, vector<32x96xbf16>, vector<8x96xf32> -> vector<8x96xf32>
    %131 = arith.addf %130, %6 : vector<8x96xf32>
    %132 = arith.truncf %127 : vector<8x32xf32> to vector<8x32xbf16>
    %cst_61 = arith.constant dense<0.000000e+00> : vector<8x96xf32>
    %133 = tpu.matmul %132, %1, %cst_61 {dimension_numbers = #tpu.dot_dimension_numbers<[1], [0], [0], [1], [0, 0, 1, 1], [], []>} : vector<8x32xbf16>, vector<32x96xbf16>, vector<8x96xf32> -> vector<8x96xf32>
    %134 = arith.addf %133, %9 : vector<8x96xf32>
    %135 = vector.extract_strided_slice %131 {offsets = [0, 0], sizes = [8, 32], strides = [1, 1]} : vector<8x96xf32> to vector<8x32xf32>
    %136 = vector.extract_strided_slice %134 {offsets = [0, 0], sizes = [8, 32], strides = [1, 1]} : vector<8x96xf32> to vector<8x32xf32>
    %137 = arith.addf %135, %136 : vector<8x32xf32>
    %138 = arith.negf %137 : vector<8x32xf32>
    %139 = math.exp %138 : vector<8x32xf32>
    %cst_62 = arith.constant 1.000000e+00 : f32
    %140 = vector.broadcast %cst_62 : f32 to vector<8x32xf32>
    %141 = arith.addf %140, %139 : vector<8x32xf32>
    %142 = arith.divf %140, %141 : vector<8x32xf32>
    %143 = vector.extract_strided_slice %131 {offsets = [0, 32], sizes = [8, 32], strides = [1, 1]} : vector<8x96xf32> to vector<8x32xf32>
    %144 = vector.extract_strided_slice %134 {offsets = [0, 32], sizes = [8, 32], strides = [1, 1]} : vector<8x96xf32> to vector<8x32xf32>
    %145 = arith.addf %143, %144 : vector<8x32xf32>
    %146 = arith.negf %145 : vector<8x32xf32>
    %147 = math.exp %146 : vector<8x32xf32>
    %cst_63 = arith.constant 1.000000e+00 : f32
    %148 = vector.broadcast %cst_63 : f32 to vector<8x32xf32>
    %149 = arith.addf %148, %147 : vector<8x32xf32>
    %150 = arith.divf %148, %149 : vector<8x32xf32>
    %151 = vector.extract_strided_slice %131 {offsets = [0, 64], sizes = [8, 32], strides = [1, 1]} : vector<8x96xf32> to vector<8x32xf32>
    %152 = vector.extract_strided_slice %134 {offsets = [0, 64], sizes = [8, 32], strides = [1, 1]} : vector<8x96xf32> to vector<8x32xf32>
    %153 = arith.mulf %142, %152 : vector<8x32xf32>
    %154 = arith.addf %151, %153 : vector<8x32xf32>
    %155 = math.tanh %154 : vector<8x32xf32>
    %cst_64 = arith.constant 1.000000e+00 : f32
    %156 = vector.broadcast %cst_64 : f32 to vector<8x32xf32>
    %157 = arith.subf %156, %150 : vector<8x32xf32>
    %158 = arith.mulf %157, %155 : vector<8x32xf32>
    %159 = arith.mulf %150, %127 : vector<8x32xf32>
    %160 = arith.addf %158, %159 : vector<8x32xf32>
    %161 = arith.truncf %160 : vector<8x32xf32> to vector<8x32xbf16>
    %cst_65 = arith.constant dense<0.000000e+00> : vector<8x96xf32>
    %162 = tpu.matmul %161, %2, %cst_65 {dimension_numbers = #tpu.dot_dimension_numbers<[1], [0], [0], [1], [0, 0, 1, 1], [], []>} : vector<8x32xbf16>, vector<32x96xbf16>, vector<8x96xf32> -> vector<8x96xf32>
    %163 = arith.addf %162, %12 : vector<8x96xf32>
    %164 = vector.extract_strided_slice %163 {offsets = [0, 0], sizes = [8, 32], strides = [1, 1]} : vector<8x96xf32> to vector<8x32xf32>
    %165 = vector.extract_strided_slice %163 {offsets = [0, 32], sizes = [8, 64], strides = [1, 1]} : vector<8x96xf32> to vector<8x64xf32>
    %166 = vector.shape_cast %165 : vector<8x64xf32> to vector<1x8x64xf32>
    %167 = arith.index_cast %128 : i32 to index
    %c0_66 = arith.constant 0 : index
    %c0_67 = arith.constant 0 : index
    %168 = vector.load %arg16[%167, %c0_66, %c0_67] : memref<6x8x64xf32, #tpu.memory_space<vmem>>, vector<1x8x64xf32>
    tpu.vector_store %arg16[%167, %c0_66, %c0_67], %166 {strides = array<i32>} : memref<6x8x64xf32, #tpu.memory_space<vmem>>, vector<1x8x64xf32>,
    %c1_i32_68 = arith.constant 1 : i32
    %169 = arith.addi %c1_i32_58, %c1_i32_68 : i32
    %c3_i32_69 = arith.constant 3 : i32
    %170 = vector.broadcast %c3_i32_69 : i32 to vector<6x1x1xi32>
    %171 = arith.subi %34, %170 : vector<6x1x1xi32>
    %c0_i32_70 = arith.constant 0 : i32
    %172 = vector.broadcast %c0_i32_70 : i32 to vector<6x1x1xi32>
    %173 = arith.maxsi %171, %172 : vector<6x1x1xi32>
    %174 = vector.broadcast %169 : i32 to vector<6x1x1xi32>
    %175 = arith.subi %174, %173 : vector<6x1x1xi32>
    %176 = arith.sitofp %175 : vector<6x1x1xi32> to vector<6x1x1xf32>
    %c0_71 = arith.constant 0 : index
    %c0_72 = arith.constant 0 : index
    %c0_73 = arith.constant 0 : index
    %177 = vector.load %arg16[%c0_71, %c0_72, %c0_73] : memref<6x8x64xf32, #tpu.memory_space<vmem>>, vector<6x8x64xf32>
    %178 = vector.shape_cast %16 : vector<6x64xf32> to vector<6x1x64xf32>
    %179 = vector.broadcast %176 : vector<6x1x1xf32> to vector<6x1x64xf32>
    %180 = arith.mulf %179, %178 : vector<6x1x64xf32>
    %181 = vector.broadcast %180 : vector<6x1x64xf32> to vector<6x8x64xf32>
    %182 = arith.addf %177, %181 : vector<6x8x64xf32>
    %183 = vector.extract_strided_slice %182 {offsets = [0, 0, 0], sizes = [6, 8, 32], strides = [1, 1, 1]} : vector<6x8x64xf32> to vector<6x8x32xf32>
    %184 = vector.extract_strided_slice %182 {offsets = [0, 0, 32], sizes = [6, 8, 32], strides = [1, 1, 1]} : vector<6x8x64xf32> to vector<6x8x32xf32>
    %185 = vector.shape_cast %164 : vector<8x32xf32> to vector<1x8x32xf32>
    %186 = vector.broadcast %185 : vector<1x8x32xf32> to vector<6x8x32xf32>
    %187 = arith.mulf %186, %183 : vector<6x8x32xf32>
    %cst_74 = arith.constant dense<0.000000e+00> : vector<6x8xf32>
    %188 = vector.multi_reduction <add>, %187, %cst_74 [2] : vector<6x8x32xf32> to vector<6x8xf32>
    %cst_75 = arith.constant 0.176776692 : f32
    %189 = vector.broadcast %cst_75 : f32 to vector<6x8xf32>
    %190 = arith.mulf %188, %189 : vector<6x8xf32>
    %191 = vector.broadcast %128 : i32 to vector<6x8xi32>
    %192 = arith.cmpi sle, %35, %191 : vector<6x8xi32>
    %cst_76 = arith.constant -1.000000e+30 : f32
    %193 = vector.broadcast %cst_76 : f32 to vector<6x8xf32>
    %194 = arith.select %192, %190, %193 : vector<6x8xi1>, vector<6x8xf32>
    %cst_77 = arith.constant dense<0xFF800000> : vector<8xf32>
    %195 = vector.multi_reduction <maximumf>, %194, %cst_77 [0] : vector<6x8xf32> to vector<8xf32>
    %196 = vector.shape_cast %195 : vector<8xf32> to vector<1x8xf32>
    %197 = vector.broadcast %196 : vector<1x8xf32> to vector<6x8xf32>
    %198 = arith.subf %194, %197 : vector<6x8xf32>
    %199 = math.exp %198 : vector<6x8xf32>
    %cst_78 = arith.constant dense<0.000000e+00> : vector<8xf32>
    %200 = vector.multi_reduction <add>, %199, %cst_78 [0] : vector<6x8xf32> to vector<8xf32>
    %201 = vector.shape_cast %200 : vector<8xf32> to vector<1x8xf32>
    %202 = tpu.reciprocal %201 {approx = true} : vector<1x8xf32> -> vector<1x8xf32>
    %203 = vector.broadcast %202 : vector<1x8xf32> to vector<6x8xf32>
    %204 = arith.mulf %199, %203 : vector<6x8xf32>
    %205 = vector.shape_cast %204 : vector<6x8xf32> to vector<6x8x1xf32>
    %206 = vector.broadcast %205 : vector<6x8x1xf32> to vector<6x8x32xf32>
    %207 = arith.mulf %206, %184 : vector<6x8x32xf32>
    %cst_79 = arith.constant dense<0.000000e+00> : vector<8x32xf32>
    %208 = vector.multi_reduction <add>, %207, %cst_79 [0] : vector<6x8x32xf32> to vector<8x32xf32>
    %209 = arith.truncf %208 : vector<8x32xf32> to vector<8x32xbf16>
    %cst_80 = arith.constant dense<0.000000e+00> : vector<8x32xf32>
    %210 = tpu.matmul %209, %3, %cst_80 {dimension_numbers = #tpu.dot_dimension_numbers<[1], [0], [0], [1], [0, 0, 1, 1], [], []>} : vector<8x32xbf16>, vector<32x32xbf16>, vector<8x32xf32> -> vector<8x32xf32>
    %211 = arith.addf %210, %15 : vector<8x32xf32>
    %212 = vector.shape_cast %211 : vector<8x32xf32> to vector<1x8x32xf32>
    %c1_i32_81 = arith.constant 1 : i32
    %213 = arith.addi %c1_i32_58, %c1_i32_81 : i32
    %214 = arith.index_cast %213 : i32 to index
    %c0_82 = arith.constant 0 : index
    %c0_83 = arith.constant 0 : index
    %215 = vector.load %arg17[%214, %c0_82, %c0_83] : memref<4x8x32xf32, #tpu.memory_space<vmem>>, vector<1x8x32xf32>
    tpu.vector_store %arg17[%214, %c0_82, %c0_83], %212 {strides = array<i32>} : memref<4x8x32xf32, #tpu.memory_space<vmem>>, vector<1x8x32xf32>,
    %216 = arith.index_cast %128 : i32 to index
    %c0_84 = arith.constant 0 : index
    %217 = vector.load %arg3[%216, %c0_84] : memref<6x32xf32, #tpu.memory_space<vmem>>, vector<1x32xf32>
    %218 = vector.broadcast %217 : vector<1x32xf32> to vector<8x32xf32>
    %219 = arith.addf %160, %218 : vector<8x32xf32>
    %c2_i32 = arith.constant 2 : i32
    %c3_i32_85 = arith.constant 3 : i32
    %220 = arith.addi %c3_i32_85, %c2_i32 : i32
    %221 = arith.truncf %211 : vector<8x32xf32> to vector<8x32xbf16>
    %cst_86 = arith.constant dense<0.000000e+00> : vector<8x96xf32>
    %222 = tpu.matmul %221, %0, %cst_86 {dimension_numbers = #tpu.dot_dimension_numbers<[1], [0], [0], [1], [0, 0, 1, 1], [], []>} : vector<8x32xbf16>, vector<32x96xbf16>, vector<8x96xf32> -> vector<8x96xf32>
    %223 = arith.addf %222, %6 : vector<8x96xf32>
    %224 = arith.truncf %219 : vector<8x32xf32> to vector<8x32xbf16>
    %cst_87 = arith.constant dense<0.000000e+00> : vector<8x96xf32>
    %225 = tpu.matmul %224, %1, %cst_87 {dimension_numbers = #tpu.dot_dimension_numbers<[1], [0], [0], [1], [0, 0, 1, 1], [], []>} : vector<8x32xbf16>, vector<32x96xbf16>, vector<8x96xf32> -> vector<8x96xf32>
    %226 = arith.addf %225, %9 : vector<8x96xf32>
    %227 = vector.extract_strided_slice %223 {offsets = [0, 0], sizes = [8, 32], strides = [1, 1]} : vector<8x96xf32> to vector<8x32xf32>
    %228 = vector.extract_strided_slice %226 {offsets = [0, 0], sizes = [8, 32], strides = [1, 1]} : vector<8x96xf32> to vector<8x32xf32>
    %229 = arith.addf %227, %228 : vector<8x32xf32>
    %230 = arith.negf %229 : vector<8x32xf32>
    %231 = math.exp %230 : vector<8x32xf32>
    %cst_88 = arith.constant 1.000000e+00 : f32
    %232 = vector.broadcast %cst_88 : f32 to vector<8x32xf32>
    %233 = arith.addf %232, %231 : vector<8x32xf32>
    %234 = arith.divf %232, %233 : vector<8x32xf32>
    %235 = vector.extract_strided_slice %223 {offsets = [0, 32], sizes = [8, 32], strides = [1, 1]} : vector<8x96xf32> to vector<8x32xf32>
    %236 = vector.extract_strided_slice %226 {offsets = [0, 32], sizes = [8, 32], strides = [1, 1]} : vector<8x96xf32> to vector<8x32xf32>
    %237 = arith.addf %235, %236 : vector<8x32xf32>
    %238 = arith.negf %237 : vector<8x32xf32>
    %239 = math.exp %238 : vector<8x32xf32>
    %cst_89 = arith.constant 1.000000e+00 : f32
    %240 = vector.broadcast %cst_89 : f32 to vector<8x32xf32>
    %241 = arith.addf %240, %239 : vector<8x32xf32>
    %242 = arith.divf %240, %241 : vector<8x32xf32>
    %243 = vector.extract_strided_slice %223 {offsets = [0, 64], sizes = [8, 32], strides = [1, 1]} : vector<8x96xf32> to vector<8x32xf32>
    %244 = vector.extract_strided_slice %226 {offsets = [0, 64], sizes = [8, 32], strides = [1, 1]} : vector<8x96xf32> to vector<8x32xf32>
    %245 = arith.mulf %234, %244 : vector<8x32xf32>
    %246 = arith.addf %243, %245 : vector<8x32xf32>
    %247 = math.tanh %246 : vector<8x32xf32>
    %cst_90 = arith.constant 1.000000e+00 : f32
    %248 = vector.broadcast %cst_90 : f32 to vector<8x32xf32>
    %249 = arith.subf %248, %242 : vector<8x32xf32>
    %250 = arith.mulf %249, %247 : vector<8x32xf32>
    %251 = arith.mulf %242, %219 : vector<8x32xf32>
    %252 = arith.addf %250, %251 : vector<8x32xf32>
    %253 = arith.truncf %252 : vector<8x32xf32> to vector<8x32xbf16>
    %cst_91 = arith.constant dense<0.000000e+00> : vector<8x96xf32>
    %254 = tpu.matmul %253, %2, %cst_91 {dimension_numbers = #tpu.dot_dimension_numbers<[1], [0], [0], [1], [0, 0, 1, 1], [], []>} : vector<8x32xbf16>, vector<32x96xbf16>, vector<8x96xf32> -> vector<8x96xf32>
    %255 = arith.addf %254, %12 : vector<8x96xf32>
    %256 = vector.extract_strided_slice %255 {offsets = [0, 0], sizes = [8, 32], strides = [1, 1]} : vector<8x96xf32> to vector<8x32xf32>
    %257 = vector.extract_strided_slice %255 {offsets = [0, 32], sizes = [8, 64], strides = [1, 1]} : vector<8x96xf32> to vector<8x64xf32>
    %258 = vector.shape_cast %257 : vector<8x64xf32> to vector<1x8x64xf32>
    %259 = arith.index_cast %220 : i32 to index
    %c0_92 = arith.constant 0 : index
    %c0_93 = arith.constant 0 : index
    %260 = vector.load %arg16[%259, %c0_92, %c0_93] : memref<6x8x64xf32, #tpu.memory_space<vmem>>, vector<1x8x64xf32>
    tpu.vector_store %arg16[%259, %c0_92, %c0_93], %258 {strides = array<i32>} : memref<6x8x64xf32, #tpu.memory_space<vmem>>, vector<1x8x64xf32>,
    %c1_i32_94 = arith.constant 1 : i32
    %261 = arith.addi %c2_i32, %c1_i32_94 : i32
    %c3_i32_95 = arith.constant 3 : i32
    %262 = vector.broadcast %c3_i32_95 : i32 to vector<6x1x1xi32>
    %263 = arith.subi %34, %262 : vector<6x1x1xi32>
    %c0_i32_96 = arith.constant 0 : i32
    %264 = vector.broadcast %c0_i32_96 : i32 to vector<6x1x1xi32>
    %265 = arith.maxsi %263, %264 : vector<6x1x1xi32>
    %266 = vector.broadcast %261 : i32 to vector<6x1x1xi32>
    %267 = arith.subi %266, %265 : vector<6x1x1xi32>
    %268 = arith.sitofp %267 : vector<6x1x1xi32> to vector<6x1x1xf32>
    %c0_97 = arith.constant 0 : index
    %c0_98 = arith.constant 0 : index
    %c0_99 = arith.constant 0 : index
    %269 = vector.load %arg16[%c0_97, %c0_98, %c0_99] : memref<6x8x64xf32, #tpu.memory_space<vmem>>, vector<6x8x64xf32>
    %270 = vector.shape_cast %16 : vector<6x64xf32> to vector<6x1x64xf32>
    %271 = vector.broadcast %268 : vector<6x1x1xf32> to vector<6x1x64xf32>
    %272 = arith.mulf %271, %270 : vector<6x1x64xf32>
    %273 = vector.broadcast %272 : vector<6x1x64xf32> to vector<6x8x64xf32>
    %274 = arith.addf %269, %273 : vector<6x8x64xf32>
    %275 = vector.extract_strided_slice %274 {offsets = [0, 0, 0], sizes = [6, 8, 32], strides = [1, 1, 1]} : vector<6x8x64xf32> to vector<6x8x32xf32>
    %276 = vector.extract_strided_slice %274 {offsets = [0, 0, 32], sizes = [6, 8, 32], strides = [1, 1, 1]} : vector<6x8x64xf32> to vector<6x8x32xf32>
    %277 = vector.shape_cast %256 : vector<8x32xf32> to vector<1x8x32xf32>
    %278 = vector.broadcast %277 : vector<1x8x32xf32> to vector<6x8x32xf32>
    %279 = arith.mulf %278, %275 : vector<6x8x32xf32>
    %cst_100 = arith.constant dense<0.000000e+00> : vector<6x8xf32>
    %280 = vector.multi_reduction <add>, %279, %cst_100 [2] : vector<6x8x32xf32> to vector<6x8xf32>
    %cst_101 = arith.constant 0.176776692 : f32
    %281 = vector.broadcast %cst_101 : f32 to vector<6x8xf32>
    %282 = arith.mulf %280, %281 : vector<6x8xf32>
    %283 = vector.broadcast %220 : i32 to vector<6x8xi32>
    %284 = arith.cmpi sle, %35, %283 : vector<6x8xi32>
    %cst_102 = arith.constant -1.000000e+30 : f32
    %285 = vector.broadcast %cst_102 : f32 to vector<6x8xf32>
    %286 = arith.select %284, %282, %285 : vector<6x8xi1>, vector<6x8xf32>
    %cst_103 = arith.constant dense<0xFF800000> : vector<8xf32>
    %287 = vector.multi_reduction <maximumf>, %286, %cst_103 [0] : vector<6x8xf32> to vector<8xf32>
    %288 = vector.shape_cast %287 : vector<8xf32> to vector<1x8xf32>
    %289 = vector.broadcast %288 : vector<1x8xf32> to vector<6x8xf32>
    %290 = arith.subf %286, %289 : vector<6x8xf32>
    %291 = math.exp %290 : vector<6x8xf32>
    %cst_104 = arith.constant dense<0.000000e+00> : vector<8xf32>
    %292 = vector.multi_reduction <add>, %291, %cst_104 [0] : vector<6x8xf32> to vector<8xf32>
    %293 = vector.shape_cast %292 : vector<8xf32> to vector<1x8xf32>
    %294 = tpu.reciprocal %293 {approx = true} : vector<1x8xf32> -> vector<1x8xf32>
    %295 = vector.broadcast %294 : vector<1x8xf32> to vector<6x8xf32>
    %296 = arith.mulf %291, %295 : vector<6x8xf32>
    %297 = vector.shape_cast %296 : vector<6x8xf32> to vector<6x8x1xf32>
    %298 = vector.broadcast %297 : vector<6x8x1xf32> to vector<6x8x32xf32>
    %299 = arith.mulf %298, %276 : vector<6x8x32xf32>
    %cst_105 = arith.constant dense<0.000000e+00> : vector<8x32xf32>
    %300 = vector.multi_reduction <add>, %299, %cst_105 [0] : vector<6x8x32xf32> to vector<8x32xf32>
    %301 = arith.truncf %300 : vector<8x32xf32> to vector<8x32xbf16>
    %cst_106 = arith.constant dense<0.000000e+00> : vector<8x32xf32>
    %302 = tpu.matmul %301, %3, %cst_106 {dimension_numbers = #tpu.dot_dimension_numbers<[1], [0], [0], [1], [0, 0, 1, 1], [], []>} : vector<8x32xbf16>, vector<32x32xbf16>, vector<8x32xf32> -> vector<8x32xf32>
    %303 = arith.addf %302, %15 : vector<8x32xf32>
    %304 = vector.shape_cast %303 : vector<8x32xf32> to vector<1x8x32xf32>
    %c1_i32_107 = arith.constant 1 : i32
    %305 = arith.addi %c2_i32, %c1_i32_107 : i32
    %306 = arith.index_cast %305 : i32 to index
    %c0_108 = arith.constant 0 : index
    %c0_109 = arith.constant 0 : index
    %307 = vector.load %arg17[%306, %c0_108, %c0_109] : memref<4x8x32xf32, #tpu.memory_space<vmem>>, vector<1x8x32xf32>
    tpu.vector_store %arg17[%306, %c0_108, %c0_109], %304 {strides = array<i32>} : memref<4x8x32xf32, #tpu.memory_space<vmem>>, vector<1x8x32xf32>,
    %308 = arith.index_cast %220 : i32 to index
    %c0_110 = arith.constant 0 : index
    %309 = vector.load %arg3[%308, %c0_110] : memref<6x32xf32, #tpu.memory_space<vmem>>, vector<1x32xf32>
    %310 = vector.broadcast %309 : vector<1x32xf32> to vector<8x32xf32>
    %311 = arith.addf %252, %310 : vector<8x32xf32>
    %c3_i32_111 = arith.constant 3 : i32
    %c0_112 = arith.constant 0 : index
    %c0_113 = arith.constant 0 : index
    %c0_114 = arith.constant 0 : index
    %312 = vector.load %arg17[%c0_112, %c0_113, %c0_114] : memref<4x8x32xf32, #tpu.memory_space<vmem>>, vector<4x8x32xf32>
    %313 = vector.shape_cast %312 : vector<4x8x32xf32> to vector<32x32xf32>
    %314 = arith.truncf %313 : vector<32x32xf32> to vector<32x32xbf16>
    %c0_115 = arith.constant 0 : index
    %c0_116 = arith.constant 0 : index
    %315 = vector.load %arg13[%c0_115, %c0_116] : memref<32x128xbf16, #tpu.memory_space<vmem>>, vector<32x128xbf16>
    %cst_117 = arith.constant dense<0.000000e+00> : vector<32x128xf32>
    %316 = tpu.matmul %314, %315, %cst_117 {dimension_numbers = #tpu.dot_dimension_numbers<[1], [0], [0], [1], [0, 0, 1, 1], [], []>} : vector<32x32xbf16>, vector<32x128xbf16>, vector<32x128xf32> -> vector<32x128xf32>
    %c0_118 = arith.constant 0 : index
    %c0_119 = arith.constant 0 : index
    %317 = vector.load %arg14[%c0_118, %c0_119] : memref<1x128xf32, #tpu.memory_space<vmem>>, vector<1x128xf32>
    %318 = vector.broadcast %317 : vector<1x128xf32> to vector<32x128xf32>
    %319 = arith.addf %316, %318 : vector<32x128xf32>
    %320 = vector.shape_cast %319 : vector<32x128xf32> to vector<4x8x128xf32>
    %c0_120 = arith.constant 0 : index
    %c0_121 = arith.constant 0 : index
    %c0_122 = arith.constant 0 : index
    %321 = vector.load %arg15[%c0_120, %c0_121, %c0_122] : memref<4x8x128xf32, #tpu.memory_space<vmem>>, vector<4x8x128xf32>
    tpu.vector_store %arg15[%c0_120, %c0_121, %c0_122], %320 {strides = array<i32>} : memref<4x8x128xf32, #tpu.memory_space<vmem>>, vector<4x8x128xf32>,
    return
  }
  func.func @transform_0(%arg0: i32) -> (i32, i32, i32) {
    %c0_i32 = arith.constant 0 : i32
    %c0_i32_0 = arith.constant 0 : i32
    %c0_i32_1 = arith.constant 0 : i32
    return %c0_i32, %arg0, %c0_i32_0 : i32, i32, i32
  }
  func.func @transform_1(%arg0: i32) -> (i32, i32) {
    %c0_i32 = arith.constant 0 : i32
    %c0_i32_0 = arith.constant 0 : i32
    return %arg0, %c0_i32 : i32, i32
  }
  func.func @transform_2(%arg0: i32) -> (i32, i32) {
    %c0_i32 = arith.constant 0 : i32
    %c0_i32_0 = arith.constant 0 : i32
    %c0_i32_1 = arith.constant 0 : i32
    return %c0_i32, %c0_i32_0 : i32, i32
  }
  func.func @transform_3(%arg0: i32) -> (i32, i32) {
    %c0_i32 = arith.constant 0 : i32
    %c0_i32_0 = arith.constant 0 : i32
    %c0_i32_1 = arith.constant 0 : i32
    return %c0_i32, %c0_i32_0 : i32, i32
  }
  func.func @transform_4(%arg0: i32) -> (i32, i32) {
    %c0_i32 = arith.constant 0 : i32
    %c0_i32_0 = arith.constant 0 : i32
    %c0_i32_1 = arith.constant 0 : i32
    return %c0_i32, %c0_i32_0 : i32, i32
  }
  func.func @transform_5(%arg0: i32) -> (i32, i32) {
    %c0_i32 = arith.constant 0 : i32
    %c0_i32_0 = arith.constant 0 : i32
    %c0_i32_1 = arith.constant 0 : i32
    return %c0_i32, %c0_i32_0 : i32, i32
  }
  func.func @transform_6(%arg0: i32) -> (i32, i32) {
    %c0_i32 = arith.constant 0 : i32
    %c0_i32_0 = arith.constant 0 : i32
    %c0_i32_1 = arith.constant 0 : i32
    return %c0_i32, %c0_i32_0 : i32, i32
  }
  func.func @transform_7(%arg0: i32) -> (i32, i32) {
    %c0_i32 = arith.constant 0 : i32
    %c0_i32_0 = arith.constant 0 : i32
    %c0_i32_1 = arith.constant 0 : i32
    return %c0_i32, %c0_i32_0 : i32, i32
  }
  func.func @transform_8(%arg0: i32) -> (i32, i32) {
    %c0_i32 = arith.constant 0 : i32
    %c0_i32_0 = arith.constant 0 : i32
    %c0_i32_1 = arith.constant 0 : i32
    return %c0_i32, %c0_i32_0 : i32, i32
  }
  func.func @transform_9(%arg0: i32) -> (i32, i32) {
    %c0_i32 = arith.constant 0 : i32
    %c0_i32_0 = arith.constant 0 : i32
    %c0_i32_1 = arith.constant 0 : i32
    return %c0_i32, %c0_i32_0 : i32, i32
  }
  func.func @transform_10(%arg0: i32) -> (i32, i32) {
    %c0_i32 = arith.constant 0 : i32
    %c0_i32_0 = arith.constant 0 : i32
    %c0_i32_1 = arith.constant 0 : i32
    return %c0_i32, %c0_i32_0 : i32, i32
  }
  func.func @transform_11(%arg0: i32) -> (i32, i32) {
    %c0_i32 = arith.constant 0 : i32
    %c0_i32_0 = arith.constant 0 : i32
    %c0_i32_1 = arith.constant 0 : i32
    return %c0_i32, %c0_i32_0 : i32, i32
  }
  func.func @transform_12(%arg0: i32) -> (i32, i32) {
    %c0_i32 = arith.constant 0 : i32
    %c0_i32_0 = arith.constant 0 : i32
    %c0_i32_1 = arith.constant 0 : i32
    return %c0_i32, %c0_i32_0 : i32, i32
  }
  func.func @transform_13(%arg0: i32) -> (i32, i32) {
    %c0_i32 = arith.constant 0 : i32
    %c0_i32_0 = arith.constant 0 : i32
    %c0_i32_1 = arith.constant 0 : i32
    return %c0_i32, %c0_i32_0 : i32, i32
  }
  func.func @transform_14(%arg0: i32) -> (i32, i32, i32) {
    %c0_i32 = arith.constant 0 : i32
    %c0_i32_0 = arith.constant 0 : i32
    %c0_i32_1 = arith.constant 0 : i32
    return %c0_i32, %arg0, %c0_i32_0 : i32, i32, i32
  }
}

</mosaic_0001>

<bundles_post_ra>
// kernel: _unnamed_function_.1
= control target key start
LH: loop header
LB: loop body
LE: loop exit
PB: predicated region body
PF: predicated region fallthrough
CT: control target
= control target key end

     0   :  { %v1906_v1 = vmov 0.0   ;;  %s1907_s15 = smov 96   ;;  %vm124_vm0 = vcmask 261120   ;;  %vm1908_vm1 = vmmov 0   ;;  %s1909_s17 = smov 64   ;;  %vm93_vm2 = vcmask 523264   ;;  %s2509_s8 = inlined_call_operand.vmem [shape: bf16[32,96], index: 8, kind: input, shape index: {}]   ;;  %s2510_s0 = inlined_call_operand.vmem [shape: f32[3,8,32], index: 0, kind: input, shape index: {}]   ;;  %s2511_s4 = inlined_call_operand.vmem [shape: bf16[32,96], index: 4, kind: input, shape index: {}]   ;;  %s2512_s5 = inlined_call_operand.vmem [shape: bf16[32,96], index: 5, kind: input, shape index: {}]   ;;  %s2513_s1 = inlined_call_operand.vmem [shape: f32[8,32], index: 1, kind: input, shape index: {}]   ;;  %s2514_s7 = inlined_call_operand.vmem [shape: f32[1,96], index: 7, kind: input, shape index: {}]   ;;  %s2515_s6 = inlined_call_operand.vmem [shape: f32[1,96], index: 6, kind: input, shape index: {}]   ;;  %s2516_s9 = inlined_call_operand.vmem [shape: f32[1,96], index: 9, kind: input, shape index: {}]   ;;  %s2517_s3 = inlined_call_operand.vmem [shape: f32[6,64], index: 3, kind: input, shape index: {}]   ;;  %s2518_s2 = inlined_call_operand.vmem [shape: f32[6,32], index: 2, kind: input, shape index: {}]   ;;  %s2519_s10 = inlined_call_operand.vmem [shape: bf16[32,32], index: 10, kind: input, shape index: {}]   ;;  %s2520_s11 = inlined_call_operand.vmem [shape: f32[1,32], index: 11, kind: input, shape index: {}]   ;;  %s2521_s12 = inlined_call_operand.vmem [shape: bf16[32,128], index: 12, kind: input, shape index: {}]   ;;  %s2522_s13 = inlined_call_operand.vmem [shape: f32[1,128], index: 13, kind: input, shape index: {}]   ;;  %s2523_s14 = inlined_call_operand.vmem [shape: f32[4,8,128], index: 14, kind: output, shape index: {}]  }
   0x1   :  { %v1990_v0 = vld [vmem:[%s2509_s8 + $0x8] sm:$0xff]   ;;  %1753 = vmatprep.subr.bf16.mxu1 %v1906_v1  ;;  %v1998_v2 = vld [vmem:[%s2509_s8] sm:$0xff]   ;;  %1757 = vmatprep.mubr.msk.bf16.mxu1 %vm1908_vm1, %v1906_v1  ;;  %v1672_v11 = vld [vmem:[%s2510_s0 + $0x10] sm:$0xff]  ;;  %94 = vst.msk [vmem:[#allocation2] sm:$0xff] %vm93_vm2, %v1906_v1  ;;  %v186_v40 = vlaneseq  ;;  %v1911_v41 = vmov 1966171168  }
   0x2   :  { %117 = vrot.lane.b32.xlu0 %v1990_v0, %s1907_s15  ;;  %v100_v3 = vld [vmem:[%s2510_s0] sm:$0xff]  ;;  %v101_v4 = vld [vmem:[%s2510_s0 + $0x8] sm:$0xff]  ;;  %v244_v13 = vpack.c.bf16 %v1672_v11, %v1672_v11  ;;  %95 = vst.msk [vmem:[#allocation2 + $0x8] sm:$0xff] %vm93_vm2, %v1906_v1  ;;  %96 = vst.msk [vmem:[#allocation2 + $0x10] sm:$0xff] %vm93_vm2, %v1906_v1  ;;  %v397_v42 = vunpack.c.l.s4 %v1911_v41  ;;  %vm559_vm3 = vcmask 1041409   ;;  %vm561_vm4 = vcmask 1042434  }
   0x3   :  { %v103_v5 = vpack.c.bf16 %v101_v4, %v100_v3  ;;  %v2011_v6 = vld [vmem:[%s2511_s4 + $0x8] sm:$0xff]   ;;  %v2020_v7 = vld [vmem:[%s2511_s4] sm:$0xff]   ;;  %97 = vst.msk [vmem:[#allocation2 + $0x18] sm:$0xff] %vm93_vm2, %v1906_v1  ;;  %98 = vst.msk [vmem:[#allocation2 + $0x20] sm:$0xff] %vm93_vm2, %v1906_v1  ;;  %v2095_v43 = vshrl.u32 %v186_v40, 7  ;;  %vm563_vm5 = vcmask 1043459  }
   0x4   :  { %1754 = vmatpush3.bf16.msra.mxu1 %v2011_v6  ;;  %v182_v8 = vld [vmem:[%s2513_s1] sm:$0xff]  ;;  %v2042_v14 = vld [vmem:[%s2512_s5 + $0x8] sm:$0xff]   ;;  %99 = vst.msk [vmem:[#allocation2 + $0x28] sm:$0xff] %vm93_vm2, %v1906_v1  ;;  %v398_v44 = vunpack.c.0.s8 %v397_v42  ;;  %vm565_vm6 = vcmask 1044484   ;;  %vm567_vm7 = vcmask 1045509   ;;  %vm571_vm9 = vcmask 62464  }
   0x5   :  { %1749 = vmatprep.mubr.msk.bf16.mxu0 %vm124_vm0, %v103_v5  ;;  %1755 = vmatprep.subr.bf16.mxu1 %v1906_v1  ;;  %183 = vst.msk [vmem:[#allocation3] sm:$0xff] %vm124_vm0, %v182_v8  ;;  %v188_v9 = vpack.c.bf16 %v182_v8, %v182_v8  ;;  %v2050_v15 = vld [vmem:[%s2512_s5] sm:$0xff]   ;;  %v2111_v57 = vsub.s32 0, %v2095_v43  ;;  %vm526_vm8 = vcmp.le.s32.totalorder %v2095_v43, 3  ;;  %vm639_vm10 = vcmask 523520  }
   0x6   :  { %115 = vrot.lane.b32.xlu0 %v1998_v2, %s1907_s15  ;;  %v2063_v24 = vld [vmem:[%s2514_s7] ss:$0 sm:$0xff]  ;;  %v2098_v45 = vsub.s32 %v398_v44, %v2095_v43  ;;  %vm977_vm11 = vcmp.le.s32.totalorder %v2095_v43, 4  ;;  %vm1407_vm12 = vcmp.le.s32.totalorder %v2095_v43, 5 }
   0x7   :  { %v2070_v30 = vld [vmem:[%s2515_s6] ss:$0 sm:$0xff]  ;;  %s1910_s6 = smov 32  }
   0x8   :  { %1756 = vmatpush3.bf16.msra.mxu1 %v2020_v7  ;;  %v2090_v39 = vld [vmem:[%s2516_s9] ss:$0 sm:$0xff] }
   0x9   :  { %1769 = vmatprep.subr.bf16.mxu1 %v1906_v1  ;;  %v92_v46 = vld [vmem:[%s2517_s3] sm:$0x3f] }
   0xa   :  { %v402_v48 = vrot.slane %v92_v46, %v2098_v45 }
   0xb   :  { %1758 = vmatmul.mubr.msk.bf16.vlgmr.msra.gmra.mxu1 %vm124_vm0, %v188_v9 }
   0xc   :  { %1770 = vmatpush3.bf16.msra.mxu1 %v1990_v0  ;;  %1773 = vmatprep.mubr.msk.bf16.mxu1 %vm1908_vm1, %v1906_v1  ;;  %v418_v51 = vrot.slane %v402_v48, %v2098_v45 }
   0xd   :  { %1771 = vmatprep.subr.bf16.mxu1 %v1906_v1 }
   0xe   :  { %v2105_v53 = vcombine.high %v418_v51, %v418_v51  ;;  %v899_v58 = vmul.f32 2.0, %v418_v51  ;;  %v1329_v60 = vmul.f32 3.0, %v418_v51 }
  0x10   :  { %1772 = vmatpush3.bf16.msra.mxu1 %v1998_v2  ;;  %v901_v59 = vmul.f32 2.0, %v2105_v53  ;;  %v1331_v61 = vmul.f32 3.0, %v2105_v53  ;;  %v914_v62 = vrot.slane %v899_v58, %v2111_v57  ;;  %v1344_v4 = vrot.slane %v1329_v60, %v2111_v57 }
  0x11   :  { %1785 = vmatprep.subr.bf16.mxu1 %v1906_v1 }
  0x12   :  { %v922_v3 = vrot.slane %v901_v59, %v2111_v57  ;;  %v1352_v5 = vrot.slane %v1331_v61, %v2111_v57 }
  0x74   :  { %v118_v10 = vpop.permute.xlu0 %117 }
  0x75   :  { %1745 = vmatprep.subr.bf16.mxu0 %v118_v10 }
  0x76   :  { %1746 = vmatpush3.bf16.msra.mxu0 %v118_v10 }
  0x78   :  { %v116_v12 = vpop.permute.xlu0 %115 }
  0x79   :  { %1747 = vmatprep.subr.bf16.mxu0 %v116_v12 }
  0x7a   :  { %1748 = vmatpush3.bf16.msra.mxu0 %v116_v12 }
  0x7b   :  { %1761 = vmatprep.subr.bf16.mxu0 %v1906_v1 }
  0x7d   :  { %1750 = vmatmul.mubr.msk.bf16.vlgmr.msra.gmra.mxu0 %vm124_vm0, %v244_v13 }
  0x7e   :  { %1762 = vmatpush3.bf16.msra.mxu0 %v2042_v14  ;;  %1765 = vmatprep.mubr.msk.bf16.mxu0 %vm1908_vm1, %v1906_v1 }
  0x7f   :  { %1763 = vmatprep.subr.bf16.mxu0 %v1906_v1 }
  0x82   :  { %1764 = vmatpush3.bf16.msra.mxu0 %v2050_v15 }
  0x83   :  { %1777 = vmatprep.subr.bf16.mxu0 %v1906_v1 }
  0x85   :  { %1766 = vmatmul.mubr.msk.bf16.vlgmr.msra.gmra.mxu0 %vm124_vm0, %v244_v13 }
  0x86   :  { %1781 = vmatprep.mubr.msk.bf16.mxu0 %vm1908_vm1, %v1906_v1 }
  0xcb   :  { %v238_v16 = vpop.f32.mrf.mxu1 }
  0xcc   :  { %v239_v31 = vadd.f32 %v2070_v30, %v238_v16 }
  0xcd   :  { %v1759_v17 = vpop.f32.mrf.mxu1 }
  0xcf   :  { %v241_v18 = vpop.f32.mrf.mxu1 }
  0xd1   :  { %v1760_v19 = vpop.f32.mrf.mxu1 }
 0x13d   :  { %v1751_v20 = vpop.f32.mrf.mxu0 }
 0x13f   :  { %v165_v21 = vpop.f32.mrf.mxu0 }
 0x141   :  { %v1752_v22 = vpop.f32.mrf.mxu0 }
 0x143   :  { %v168_v23 = vpop.f32.mrf.mxu0 }
 0x145   :  { %v294_v25 = vpop.f32.mrf.mxu0 }
 0x146   :  { %v295_v26 = vadd.f32 %v2063_v24, %v294_v25 }
 0x147   :  { %v1767_v27 = vpop.f32.mrf.mxu0 }
 0x148   :  { %308 = vrot.lane.b32.xlu1 %v295_v26, %s1909_s17  ;;  %v300_v32 = vadd.f32 %v295_v26, %v239_v31 }
 0x149   :  { %v297_v28 = vpop.f32.mrf.mxu0 }
 0x14a   :  { %v1679_v33 = vmul.f32 -1.442695, %v300_v32 }
 0x14b   :  { %v1768_v29 = vpop.f32.mrf.mxu0 }
 0x14c   :  { %1874 = vpow2.f32 %v1679_v33 }
 0x159   :  { %v1875_v34 = vpop.eup %1874 }
 0x15a   :  { %v304_v35 = vadd.f32 1.0, %v1875_v34  ;;  %v395_v34 = vcombine.high %v92_v46, %v92_v46  ;;  %v471_v46 = vrot.slane %v2105_v53, %v2111_v57 }
 0x15c   :  { %1876 = vrcp.f32 %v304_v35  ;;  %v410_v35 = vcombine.high %v402_v48, %v402_v48 }
 0x169   :  { %v1877_v36 = vpop.eup %1876 }
 0x16a   :  { %v318_v16 = vsub.f32 1.0, %v1877_v36 }
 0x1ba   :  { %v309_v37 = vpop.permute.xlu1 %308 }
 0x1bb   :  { %v311_v38 = vmul.f32 %v1877_v36, %v309_v37  ;;  %v2149_v37 = vrot.slane %v410_v35, %v2098_v45 }
 0x1bd   :  { %313 = vrot.lane.b32.xlu1 %v311_v38, %s1909_s17  ;;  %v467_v41 = vrot.slane %v2149_v37, %v2111_v57  ;;  %v441_v60 = vcombine.high %v2149_v37, %v2149_v37 }
 0x1c1   :  { %325 = vrot.lane.b32.xlu1 %v1672_v11, %s1910_s6 }
 0x1c5   :  { %121 = vrot.lane.b32.xlu1 %v2090_v39, %s1907_s15 }
 0x22f   :  { %v314_v47 = vpop.permute.xlu1 %313 }
 0x230   :  { %v316_v49 = vadd.f32 %v314_v47, %v239_v31 }
 0x232   :  { %1878 = vtanh.f32 %v316_v49 }
 0x233   :  { %v326_v50 = vpop.permute.xlu1 %325 }
 0x234   :  { %v328_v18 = vmul.f32 %v1877_v36, %v326_v50  ;;  %v409_v36 = vrot.slane %v395_v34, %v2098_v45  ;;  %v392_v50 = vld [vmem:[#allocation2 + $0x20] sm:$0xff] }
 0x236   :  { %v2152_v38 = vrot.slane %v409_v36, %v2098_v45  ;;  %v411_v59 = vcombine.high %v409_v36, %v409_v36 }
 0x237   :  { %v122_v52 = vpop.permute.xlu1 %121 }
 0x238   :  { %v166_v54 = vadd.f32 %v165_v21, %v122_v52  ;;  %v174_v55 = vadd.f32 %v1751_v20, %v122_v52  ;;  %v169_v56 = vadd.f32 %v168_v23, %v122_v52  ;;  %v463_v23 = vrot.slane %v418_v51, %v2111_v57 }
 0x239   :  { %v452_v44 = vmul.f32 0.0, %v2152_v38  ;;  %v2178_v61 = vrot.slane %v411_v59, %v2098_v45 }
 0x23a   :  { %179 = vst.msk [vmem:[#allocation2] sm:$0xff] %vm93_vm2, %v166_v54  ;;  %180 = vst.msk [vmem:[#allocation2 + $0x8] sm:$0xff] %vm93_vm2, %v169_v56 }
 0x23b   :  { %181 = vst.msk [vmem:[#allocation2 + $0x10] sm:$0xff] %vm93_vm2, %v174_v55  ;;  %v479_v49 = vrot.slane %v452_v44, %v2111_v57 }
 0x23d   :  { %v2170_v55 = vadd.f32 %v479_v49, %v392_v50 }
 0x23f   :  { %v1879_v63 = vpop.eup %1878 }
 0x240   :  { %320 = vrot.lane.b32.xlu0 %v1879_v63, %s1907_s15  ;;  %v453_v63 = vmul.f32 -1.0, %v2178_v61 }
 0x241   :  { %v388_v8 = vld [vmem:[#allocation2] sm:$0xff]  ;;  %v2156_v42 = vld [vmem:[#allocation2 + $0x8] sm:$0xff] }
 0x242   :  { %v390_v9 = vld [vmem:[#allocation2 + $0x10] sm:$0xff]  ;;  %v2120_v10 = vadd.f32 %v914_v62, %v388_v8  ;;  %v2124_v12 = vadd.f32 %v1344_v4, %v388_v8  ;;  %v2142_v27 = vadd.f32 %v463_v23, %v388_v8  ;;  %v2160_v47 = vadd.f32 %v467_v41, %v2156_v42 }
 0x243   :  { %v2122_v11 = vadd.f32 %v922_v3, %v390_v9  ;;  %v2126_v13 = vadd.f32 %v1352_v5, %v390_v9  ;;  %v2166_v51 = vadd.f32 %v471_v46, %v390_v9  ;;  %v902_v3 = vmul.f32 2.0, %v441_v60 }
 0x244   :  { %v1332_v4 = vmul.f32 3.0, %v441_v60  ;;  %v475_v5 = vrot.slane %v441_v60, %v2111_v57  ;;  %v483_v8 = vrot.slane %v453_v63, %v2111_v57 }
 0x245   :  { %v926_v9 = vrot.slane %v902_v3, %v2111_v57 }
 0x2b2   :  { %v321_v17 = vpop.permute.xlu0 %320 }
 0x2b3   :  { %v323_v19 = vmul.f32 %v321_v17, %v318_v16  ;;  %v1356_v16 = vrot.slane %v1332_v4, %v2111_v57  ;;  %v2186_v17 = vld [vmem:[#allocation2 + $0x28] sm:$0xff] }
 0x2b5   :  { %v2128_v20 = vadd.f32 %v328_v18, %v323_v19  ;;  %v2191_v19 = vadd.f32 %v483_v8, %v2186_v17 }
 0x2b7   :  { %v330_v21 = vpack.c.bf16 %v2128_v20, %v2128_v20 }
 0x2b9   :  { %332 = vrot.lane.b32.xlu0 %v330_v21, %s1907_s15 }
 0x32b   :  { %v333_v22 = vpop.permute.xlu0 %332 }
 0x32c   :  { %1774 = vmatmul.mubr.msk.bf16.vlgmr.msra.gmra.mxu1 %vm124_vm0, %v333_v22 }
 0x32d   :  { %1786 = vmatpush3.bf16.msra.mxu1 %v2011_v6  ;;  %1789 = vmatprep.mubr.msk.bf16.mxu1 %vm1908_vm1, %v1906_v1 }
 0x32e   :  { %1787 = vmatprep.subr.bf16.mxu1 %v1906_v1 }
 0x331   :  { %1788 = vmatpush3.bf16.msra.mxu1 %v2020_v7 }
 0x332   :  { %1801 = vmatprep.subr.bf16.mxu1 %v1906_v1 }
 0x3ec   :  { %v373_v25 = vpop.f32.mrf.mxu1 }
 0x3ed   :  { %v374_v26 = vadd.f32 %v2090_v39, %v373_v25 }
 0x3ee   :  { %v1775_v28 = vpop.f32.mrf.mxu1 }
 0x3ef   :  { %380 = vrot.lane.b32.xlu0 %v374_v26, %s1907_s15  ;;  %v496_v29 = vmul.f32 %v2142_v27, %v374_v26  ;;  %v497_v48 = vmul.f32 %v2160_v47, %v374_v26  ;;  %v498_v54 = vmul.f32 %v2166_v51, %v374_v26  ;;  %v500_v58 = vmul.f32 %v2170_v55, %v374_v26 }
 0x3f0   :  { %v376_v31 = vpop.f32.mrf.mxu1  ;;  %v501_v28 = vmul.f32 %v2191_v19, %v374_v26 }
 0x3f1   :  { %v502_v32 = vsel %vm124_vm0, %v496_v29, 0.0  ;;  %v505_v52 = vsel %vm124_vm0, %v497_v48, 0.0  ;;  %v508_v56 = vsel %vm124_vm0, %v498_v54, 0.0  ;;  %v514_v53 = vsel %vm124_vm0, %v500_v58, 0.0 }
 0x3f2   :  { %v1776_v33 = vpop.f32.mrf.mxu1  ;;  %503 = vadd.xlane.f32.xlu1 %v502_v32  ;;  %v517_v29 = vsel %vm124_vm0, %v501_v28, 0.0  ;;  %v534_v32 = vand.u32 127, %v186_v40 }
 0x3f4   :  { %v2203_v41 = vsub.s32 %v534_v32, %v2095_v43 }
 0x40e   :  { %506 = vadd.xlane.f32.xlu0 %v505_v52 }
 0x412   :  { %509 = vadd.xlane.f32.xlu0 %v508_v56 }
 0x416   :  { %515 = vadd.xlane.f32.xlu0 %v514_v53 }
 0x461   :  { %v381_v62 = vpop.permute.xlu0 %380 }
 0x462   :  { %384 = vst.msk [vmem:[#allocation2 + $0x18] sm:$0xff] %vm93_vm2, %v381_v62 }
 0x469   :  { %v391_v18 = vld [vmem:[#allocation2 + $0x18] sm:$0xff] }
 0x46a   :  { %v2188_v45 = vadd.f32 %v475_v5, %v391_v18  ;;  %v2193_v21 = vadd.f32 %v926_v9, %v391_v18  ;;  %v2195_v22 = vadd.f32 %v1356_v16, %v391_v18 }
 0x46c   :  { %v499_v23 = vmul.f32 %v2188_v45, %v374_v26 }
 0x46e   :  { %v511_v25 = vsel %vm124_vm0, %v499_v23, 0.0 }
 0x46f   :  { %512 = vadd.xlane.f32.xlu1 %v511_v25 }
 0x473   :  { %518 = vadd.xlane.f32.xlu1 %v517_v29 }
 0x47b   :  { %v504_v34 = vpop.xlane.xlu1 %503 }
 0x47c   :  { %v520_v44 = vmul.f32 0.17677669, %v504_v34 }
 0x47e   :  { %v538_v50 = vrot.slane %v520_v44, %v2203_v41 }
 0x497   :  { %v507_v31 = vpop.xlane.xlu0 %506 }
 0x498   :  { %v521_v35 = vmul.f32 0.17677669, %v507_v31 }
 0x49a   :  { %v542_v46 = vrot.slane %v521_v35, %v2203_v41 }
 0x49b   :  { %v510_v33 = vpop.xlane.xlu0 %509 }
 0x49c   :  { %v522_v36 = vmul.f32 0.17677669, %v510_v33  ;;  %v560_v54 = vsel %vm559_vm3, %v542_v46, %v538_v50 }
 0x49e   :  { %v546_v26 = vrot.slane %v522_v36, %v2203_v41 }
 0x49f   :  { %v516_v48 = vpop.xlane.xlu0 %515 }
 0x4a0   :  { %v524_v40 = vmul.f32 0.17677669, %v516_v48  ;;  %v562_v58 = vsel %vm561_vm4, %v546_v26, %v560_v54  ;;  %v2220_v26 = vsub.s32 1, %v2095_v43  ;;  %v2225_v54 = vsub.s32 2, %v2095_v43 }
 0x4a2   :  { %v554_v62 = vrot.slane %v524_v40, %v2203_v41 }
 0x4f8   :  { %v513_v49 = vpop.xlane.xlu1 %512 }
 0x4f9   :  { %v523_v52 = vmul.f32 0.17677669, %v513_v49 }
 0x4fb   :  { %v550_v56 = vrot.slane %v523_v52, %v2203_v41 }
 0x4fc   :  { %v519_v53 = vpop.xlane.xlu1 %518 }
 0x4fd   :  { %v564_v59 = vsel %vm563_vm5, %v550_v56, %v562_v58  ;;  %v525_v60 = vmul.f32 0.17677669, %v519_v53  ;;  %v2228_v56 = vsub.s32 3, %v2095_v43 }
 0x4fe   :  { %v566_v3 = vsel %vm565_vm6, %v554_v62, %v564_v59  ;;  %v2233_v59 = vsub.s32 4, %v2095_v43 }
 0x4ff   :  { %v558_v63 = vrot.slane %v525_v60, %v2203_v41  ;;  %v2236_v60 = vsub.s32 5, %v2095_v43 }
 0x501   :  { %v568_v4 = vsel %vm567_vm7, %v558_v63, %v566_v3  ;;  %v1684_v3 = vld [vmem:[%s2518_s2 + $0x3] ss:$0 sm:$0xff] }
 0x502   :  { %v570_v5 = vsel %vm526_vm8, %v568_v4, -1e+30  ;;  %v2246_v4 = vld [vmem:[%s2519_s10 + $0x8] sm:$0xff]  }
 0x503   :  { %v572_v8 = vsel %vm571_vm9, %v570_v5, -inf  ;;  %1778 = vmatpush3.bf16.msra.mxu0 %v2246_v4 }
 0x504   :  { %v573_v9 = vrot.slane %v572_v8, 4  ;;  %1779 = vmatprep.subr.bf16.mxu0 %v1906_v1 }
 0x506   :  { %v574_v16 = vmax.f32 %v572_v8, %v573_v9 }
 0x508   :  { %v575_v18 = vrot.slane %v574_v16, 2 }
 0x50a   :  { %v576_v23 = vmax.f32 %v574_v16, %v575_v18 }
 0x50c   :  { %v577_v25 = vrot.slane %v576_v23, 1 }
 0x50e   :  { %v578_v28 = vmax.f32 %v576_v23, %v577_v25 }
 0x510   :  { %v579_v29 = vsub.f32 %v570_v5, %v578_v28  ;;  %v2252_v5 = vld [vmem:[%s2519_s10] sm:$0xff]  }
 0x511   :  { %1780 = vmatpush3.bf16.msra.mxu0 %v2252_v5 }
 0x512   :  { %v580_v31 = vmul.f32 1.442695, %v579_v29  ;;  %1793 = vmatprep.subr.bf16.mxu0 %v1906_v1 }
 0x514   :  { %1880 = vpow2.f32 %v580_v31 }
 0x521   :  { %v1881_v32 = vpop.eup %1880 }
 0x522   :  { %v582_v33 = vsel %vm571_vm9, %v1881_v32, 0.0 }
 0x523   :  { %v583_v34 = vrot.slane %v582_v33, 4 }
 0x525   :  { %v584_v35 = vadd.f32 %v583_v34, %v582_v33 }
 0x527   :  { %v585_v36 = vrot.slane %v584_v35, 2 }
 0x529   :  { %v586_v44 = vadd.f32 %v585_v36, %v584_v35 }
 0x52b   :  { %v587_v46 = vrot.slane %v586_v44, 1 }
 0x52d   :  { %v588_v48 = vadd.f32 %v587_v46, %v586_v44 }
 0x52f   :  { %1882 = vrcp.f32 %v588_v48 }
 0x53c   :  { %v1883_v49 = vpop.eup %1882 }
 0x53d   :  { %v590_v50 = vmul.f32 %v1883_v49, %v1881_v32 }
 0x53f   :  { %v601_v52 = vrot.slane %v590_v50, %v2220_v26  ;;  %v594_v40 = vrot.slane %v590_v50, %v2111_v57  ;;  %v608_v58 = vrot.slane %v590_v50, %v2225_v54  ;;  %v615_v53 = vrot.slane %v590_v50, %v2228_v56 }
 0x540   :  { %v622_v62 = vrot.slane %v590_v50, %v2233_v59  ;;  %v629_v63 = vrot.slane %v590_v50, %v2236_v60 }
 0x541   :  { %603 = vbcast.lane.b32.xlu1 %v601_v52, 256  ;;  %596 = vbcast.lane.b32.xlu0 %v594_v40, 256 }
 0x545   :  { %610 = vbcast.lane.b32.xlu1 %v608_v58, 256  ;;  %617 = vbcast.lane.b32.xlu0 %v615_v53, 256 }
 0x549   :  { %624 = vbcast.lane.b32.xlu1 %v622_v62, 256  ;;  %631 = vbcast.lane.b32.xlu0 %v629_v63, 256 }
 0x54d   :  { %718 = vrot.lane.b32.xlu0 %v1684_v3, %s1910_s6 }
 0x5b3   :  { %v604_v8 = vpop.permute.xlu1 %603  ;;  %v597_v9 = vpop.permute.xlu0 %596 }
 0x5b4   :  { %v634_v16 = vmul.f32 %v604_v8, %v2160_v47  ;;  %v633_v18 = vmul.f32 %v597_v9, %v2142_v27 }
 0x5b6   :  { %v641_v23 = vsel %vm639_vm10, %v634_v16, 0.0  ;;  %v640_v25 = vsel %vm639_vm10, %v633_v18, 0.0 }
 0x5b7   :  { %v611_v28 = vpop.permute.xlu1 %610  ;;  %v618_v29 = vpop.permute.xlu0 %617  ;;  %v642_v33 = vadd.f32 %v641_v23, %v640_v25 }
 0x5b8   :  { %v635_v31 = vmul.f32 %v611_v28, %v2166_v51  ;;  %v636_v32 = vmul.f32 %v618_v29, %v2188_v45 }
 0x5ba   :  { %v643_v34 = vsel %vm639_vm10, %v635_v31, 0.0  ;;  %v645_v47 = vsel %vm639_vm10, %v636_v32, 0.0 }
 0x5bb   :  { %v644_v35 = vadd.f32 %v643_v34, %v642_v33  ;;  %v625_v36 = vpop.permute.xlu1 %624  ;;  %v632_v44 = vpop.permute.xlu0 %631 }
 0x5bc   :  { %v637_v27 = vmul.f32 %v625_v36, %v2170_v55  ;;  %v638_v46 = vmul.f32 %v632_v44, %v2191_v19  ;;  %v2290_v55 = vld [vmem:[%s2520_s11] ss:$0 sm:$0xff] }
 0x5bd   :  { %v646_v48 = vadd.f32 %v645_v47, %v644_v35 }
 0x5be   :  { %v647_v49 = vsel %vm639_vm10, %v637_v27, 0.0  ;;  %v649_v51 = vsel %vm639_vm10, %v638_v46, 0.0 }
 0x5bf   :  { %v648_v50 = vadd.f32 %v647_v49, %v646_v48  ;;  %v719_v52 = vpop.permute.xlu0 %718 }
 0x5c0   :  { %v721_v40 = vadd.f32 %v719_v52, %v2128_v20 }
 0x5c1   :  { %v650_v45 = vadd.f32 %v649_v51, %v648_v50 }
 0x5c2   :  { %v766_v53 = vpack.c.bf16 %v721_v40, %v721_v40 }
 0x5c3   :  { %v651_v58 = vpack.c.bf16 %v650_v45, %v650_v45 }
 0x5c5   :  { %653 = vrot.lane.b32.xlu1 %v651_v58, %s1907_s15 }
 0x5c9   :  { %768 = vrot.lane.b32.xlu1 %v766_v53, %s1907_s15 }
 0x637   :  { %v654_v62 = vpop.permute.xlu1 %653 }
 0x638   :  { %1782 = vmatmul.mubr.msk.bf16.vlgmr.msra.gmra.mxu0 %vm124_vm0, %v654_v62 }
 0x639   :  { %1794 = vmatpush3.bf16.msra.mxu0 %v2042_v14  ;;  %1797 = vmatprep.mubr.msk.bf16.mxu0 %vm1908_vm1, %v1906_v1 }
 0x63a   :  { %1795 = vmatprep.subr.bf16.mxu0 %v1906_v1 }
 0x63b   :  { %v769_v20 = vpop.permute.xlu1 %768 }
 0x63d   :  { %1796 = vmatpush3.bf16.msra.mxu0 %v2050_v15 }
 0x63e   :  { %1809 = vmatprep.subr.bf16.mxu0 %v1906_v1 }
 0x640   :  { %1798 = vmatmul.mubr.msk.bf16.vlgmr.msra.gmra.mxu0 %vm124_vm0, %v769_v20 }
 0x641   :  { %1810 = vmatpush3.bf16.msra.mxu0 %v2246_v4  ;;  %1813 = vmatprep.mubr.msk.bf16.mxu0 %vm1908_vm1, %v1906_v1 }
 0x642   :  { %1811 = vmatprep.subr.bf16.mxu0 %v1906_v1 }
 0x645   :  { %1812 = vmatpush3.bf16.msra.mxu0 %v2252_v5 }
 0x646   :  { %1825 = vmatprep.subr.bf16.mxu0 %v1906_v1 }
 0x6f8   :  { %v704_v19 = vpop.f32.mrf.mxu0 }
 0x6f9   :  { %v705_v63 = vadd.f32 %v2290_v55, %v704_v19 }
 0x6fa   :  { %v1783_v3 = vpop.f32.mrf.mxu0 }
 0x6fb   :  { %711 = vst.msk [vmem:[#allocation3 + $0x8] sm:$0xff] %vm124_vm0, %v705_v63  ;;  %v722_v8 = vpack.c.bf16 %v705_v63, %v705_v63 }
 0x6fc   :  { %v707_v9 = vpop.f32.mrf.mxu0 }
 0x6fd   :  { %1790 = vmatmul.mubr.msk.bf16.vlgmr.msra.gmra.mxu1 %vm124_vm0, %v722_v8 }
 0x6fe   :  { %v1784_v16 = vpop.f32.mrf.mxu0  ;;  %1802 = vmatpush3.bf16.msra.mxu1 %v1990_v0  ;;  %1805 = vmatprep.mubr.msk.bf16.mxu1 %vm1908_vm1, %v1906_v1 }
 0x6ff   :  { %1803 = vmatprep.subr.bf16.mxu1 %v1906_v1 }
 0x700   :  { %v807_v18 = vpop.f32.mrf.mxu0 }
 0x701   :  { %v808_v23 = vadd.f32 %v2063_v24, %v807_v18 }
 0x702   :  { %v1799_v25 = vpop.f32.mrf.mxu0  ;;  %1804 = vmatpush3.bf16.msra.mxu1 %v1998_v2 }
 0x703   :  { %821 = vrot.lane.b32.xlu0 %v808_v23, %s1909_s17  ;;  %1817 = vmatprep.subr.bf16.mxu1 %v1906_v1 }
 0x704   :  { %v810_v28 = vpop.f32.mrf.mxu0 }
 0x706   :  { %v1800_v29 = vpop.f32.mrf.mxu0 }
 0x775   :  { %v822_v2 = vpop.permute.xlu0 %821 }
 0x7bd   :  { %v760_v31 = vpop.f32.mrf.mxu1 }
 0x7be   :  { %v761_v0 = vadd.f32 %v2070_v30, %v760_v31  ;;  %v900_v31 = vmul.f32 2.0, %v2149_v37 }
 0x7bf   :  { %v1791_v32 = vpop.f32.mrf.mxu1 }
 0x7c0   :  { %v813_v33 = vadd.f32 %v808_v23, %v761_v0 }
 0x7c1   :  { %v763_v34 = vpop.f32.mrf.mxu1 }
 0x7c2   :  { %v1687_v35 = vmul.f32 -1.442695, %v813_v33 }
 0x7c3   :  { %v1792_v36 = vpop.f32.mrf.mxu1 }
 0x7c4   :  { %1884 = vpow2.f32 %v1687_v35 }
 0x7d1   :  { %v1885_v44 = vpop.eup %1884 }
 0x7d2   :  { %v817_v47 = vadd.f32 1.0, %v1885_v44  ;;  %v930_v44 = vrot.slane %v2152_v38, %v2111_v57 }
 0x7d4   :  { %1886 = vrcp.f32 %v817_v47 }
 0x7e1   :  { %v1887_v27 = vpop.eup %1886 }
 0x7e2   :  { %v824_v46 = vmul.f32 %v1887_v27, %v822_v2  ;;  %v831_v51 = vsub.f32 1.0, %v1887_v27  ;;  %v837_v45 = vmul.f32 %v1887_v27, %v721_v40  ;;  %v904_v40 = vmul.f32 0.0, %v2178_v61 }
 0x7e4   :  { %826 = vrot.lane.b32.xlu1 %v824_v46, %s1909_s17  ;;  %v934_v3 = vrot.slane %v904_v40, %v2111_v57 }
 0x856   :  { %v827_v48 = vpop.permute.xlu1 %826 }
 0x857   :  { %v829_v49 = vadd.f32 %v827_v48, %v761_v0  ;;  %v918_v0 = vrot.slane %v900_v31, %v2111_v57 }
 0x859   :  { %1888 = vtanh.f32 %v829_v49  ;;  %v2334_v32 = vadd.f32 %v918_v0, %v2156_v42 }
 0x866   :  { %v1889_v50 = vpop.eup %1888 }
 0x867   :  { %833 = vrot.lane.b32.xlu0 %v1889_v50, %s1907_s15 }
 0x8d9   :  { %v834_v52 = vpop.permute.xlu0 %833 }
 0x8da   :  { %v836_v58 = vmul.f32 %v834_v52, %v831_v51 }
 0x8dc   :  { %v2306_v53 = vadd.f32 %v837_v45, %v836_v58 }
 0x8de   :  { %v839_v62 = vpack.c.bf16 %v2306_v53, %v2306_v53 }
 0x8e0   :  { %841 = vrot.lane.b32.xlu1 %v839_v62, %s1907_s15 }
 0x952   :  { %v842_v20 = vpop.permute.xlu1 %841 }
 0x953   :  { %1806 = vmatmul.mubr.msk.bf16.vlgmr.msra.gmra.mxu1 %vm124_vm0, %v842_v20 }
 0x954   :  { %1818 = vmatpush3.bf16.msra.mxu1 %v2011_v6  ;;  %1821 = vmatprep.mubr.msk.bf16.mxu1 %vm1908_vm1, %v1906_v1 }
 0x955   :  { %1819 = vmatprep.subr.bf16.mxu1 %v1906_v1 }
 0x958   :  { %1820 = vmatpush3.bf16.msra.mxu1 %v2020_v7  ;;  %v2326_v7 = vadd.f32 %v934_v3, %v2186_v17 }
 0x959   :  { %1833 = vmatprep.subr.bf16.mxu1 %v1906_v1 }
 0xa13   :  { %v880_v19 = vpop.f32.mrf.mxu1 }
 0xa14   :  { %v881_v63 = vadd.f32 %v2090_v39, %v880_v19 }
 0xa15   :  { %v1807_v8 = vpop.f32.mrf.mxu1 }
 0xa16   :  { %887 = vrot.lane.b32.xlu0 %v881_v63, %s1907_s15  ;;  %v947_v6 = vmul.f32 %v2120_v10, %v881_v63  ;;  %v950_v18 = vmul.f32 %v2193_v21, %v881_v63  ;;  %v952_v28 = vmul.f32 %v2326_v7, %v881_v63  ;;  %v948_v17 = vmul.f32 %v2334_v32, %v881_v63 }
 0xa17   :  { %v883_v9 = vpop.f32.mrf.mxu1  ;;  %v949_v34 = vmul.f32 %v2122_v11, %v881_v63 }
 0xa18   :  { %v953_v16 = vsel %vm124_vm0, %v947_v6, 0.0  ;;  %v962_v25 = vsel %vm124_vm0, %v950_v18, 0.0  ;;  %v968_v29 = vsel %vm124_vm0, %v952_v28, 0.0  ;;  %v956_v33 = vsel %vm124_vm0, %v948_v17, 0.0 }
 0xa19   :  { %954 = vadd.xlane.f32.xlu1 %v953_v16  ;;  %v1808_v23 = vpop.f32.mrf.mxu1  ;;  %v959_v35 = vsel %vm124_vm0, %v949_v34, 0.0 }
 0xa1d   :  { %963 = vadd.xlane.f32.xlu1 %v962_v25 }
 0xa21   :  { %969 = vadd.xlane.f32.xlu1 %v968_v29 }
 0xa35   :  { %957 = vadd.xlane.f32.xlu0 %v956_v33 }
 0xa39   :  { %960 = vadd.xlane.f32.xlu0 %v959_v35 }
 0xa88   :  { %v888_v36 = vpop.permute.xlu0 %887 }
 0xa89   :  { %891 = vst.msk [vmem:[#allocation2 + $0x20] sm:$0xff] %vm93_vm2, %v888_v36 }
 0xa90   :  { %v2343_v47 = vld [vmem:[#allocation2 + $0x20] sm:$0xff] }
 0xa91   :  { %v2346_v27 = vadd.f32 %v930_v44, %v2343_v47 }
 0xa93   :  { %v951_v2 = vmul.f32 %v2346_v27, %v881_v63 }
 0xa95   :  { %v965_v46 = vsel %vm124_vm0, %v951_v2, 0.0 }
 0xa96   :  { %966 = vadd.xlane.f32.xlu0 %v965_v46 }
 0xaa2   :  { %v955_v49 = vpop.xlane.xlu1 %954 }
 0xaa3   :  { %v971_v58 = vmul.f32 0.17677669, %v955_v49 }
 0xaa5   :  { %v987_v19 = vrot.slane %v971_v58, %v2203_v41 }
 0xaa6   :  { %v964_v51 = vpop.xlane.xlu1 %963 }
 0xaa7   :  { %v974_v3 = vmul.f32 0.17677669, %v964_v51 }
 0xaa9   :  { %v999_v18 = vrot.slane %v974_v3, %v2203_v41 }
 0xaaa   :  { %v970_v20 = vpop.xlane.xlu1 %969 }
 0xaab   :  { %v976_v8 = vmul.f32 0.17677669, %v970_v20 }
 0xaad   :  { %v1007_v25 = vrot.slane %v976_v8, %v2203_v41 }
 0xabe   :  { %v958_v48 = vpop.xlane.xlu0 %957 }
 0xabf   :  { %v972_v52 = vmul.f32 0.17677669, %v958_v48 }
 0xac1   :  { %v991_v62 = vrot.slane %v972_v52, %v2203_v41 }
 0xac2   :  { %v961_v50 = vpop.xlane.xlu0 %960 }
 0xac3   :  { %v973_v45 = vmul.f32 0.17677669, %v961_v50  ;;  %v1008_v63 = vsel %vm559_vm3, %v991_v62, %v987_v19 }
 0xac5   :  { %v995_v40 = vrot.slane %v973_v45, %v2203_v41 }
 0xac7   :  { %v1009_v9 = vsel %vm561_vm4, %v995_v40, %v1008_v63 }
 0xac8   :  { %v1010_v28 = vsel %vm563_vm5, %v999_v18, %v1009_v9  ;;  %v1690_v18 = vld [vmem:[%s2518_s2 + $0x4] ss:$0 sm:$0xff] }
 0xb1f   :  { %v967_v6 = vpop.xlane.xlu0 %966 }
 0xb20   :  { %v975_v16 = vmul.f32 0.17677669, %v967_v6 }
 0xb22   :  { %v1003_v23 = vrot.slane %v975_v16, %v2203_v41 }
 0xb24   :  { %v1011_v29 = vsel %vm565_vm6, %v1003_v23, %v1010_v28 }
 0xb25   :  { %v1012_v31 = vsel %vm567_vm7, %v1007_v25, %v1011_v29 }
 0xb26   :  { %v1014_v0 = vsel %vm977_vm11, %v1012_v31, -1e+30 }
 0xb27   :  { %v1015_v17 = vsel %vm571_vm9, %v1014_v0, -inf }
 0xb28   :  { %v1016_v33 = vrot.slane %v1015_v17, 4 }
 0xb2a   :  { %v1017_v34 = vmax.f32 %v1015_v17, %v1016_v33 }
 0xb2c   :  { %v1018_v35 = vrot.slane %v1017_v34, 2 }
 0xb2e   :  { %v1019_v36 = vmax.f32 %v1017_v34, %v1018_v35 }
 0xb30   :  { %v1020_v44 = vrot.slane %v1019_v36, 1 }
 0xb32   :  { %v1021_v2 = vmax.f32 %v1019_v36, %v1020_v44 }
 0xb34   :  { %v1022_v46 = vsub.f32 %v1014_v0, %v1021_v2 }
 0xb36   :  { %v1023_v48 = vmul.f32 1.442695, %v1022_v46 }
 0xb38   :  { %1890 = vpow2.f32 %v1023_v48 }
 0xb45   :  { %v1891_v49 = vpop.eup %1890 }
 0xb46   :  { %v1025_v50 = vsel %vm571_vm9, %v1891_v49, 0.0 }
 0xb47   :  { %v1026_v51 = vrot.slane %v1025_v50, 4 }
 0xb49   :  { %v1027_v52 = vadd.f32 %v1026_v51, %v1025_v50 }
 0xb4b   :  { %v1028_v45 = vrot.slane %v1027_v52, 2 }
 0xb4d   :  { %v1029_v58 = vadd.f32 %v1028_v45, %v1027_v52 }
 0xb4f   :  { %v1030_v62 = vrot.slane %v1029_v58, 1 }
 0xb51   :  { %v1031_v20 = vadd.f32 %v1030_v62, %v1029_v58 }
 0xb53   :  { %1892 = vrcp.f32 %v1031_v20 }
 0xb60   :  { %v1893_v40 = vpop.eup %1892 }
 0xb61   :  { %v1033_v19 = vmul.f32 %v1893_v40, %v1891_v49 }
 0xb63   :  { %v1044_v3 = vrot.slane %v1033_v19, %v2220_v26  ;;  %v1037_v8 = vrot.slane %v1033_v19, %v2111_v57  ;;  %v1051_v63 = vrot.slane %v1033_v19, %v2225_v54  ;;  %v1058_v6 = vrot.slane %v1033_v19, %v2228_v56 }
 0xb64   :  { %v1065_v9 = vrot.slane %v1033_v19, %v2233_v59  ;;  %v1072_v16 = vrot.slane %v1033_v19, %v2236_v60 }
 0xb65   :  { %1046 = vbcast.lane.b32.xlu1 %v1044_v3, 256  ;;  %1039 = vbcast.lane.b32.xlu0 %v1037_v8, 256 }
 0xb69   :  { %1053 = vbcast.lane.b32.xlu1 %v1051_v63, 256  ;;  %1060 = vbcast.lane.b32.xlu0 %v1058_v6, 256  ;;  %v1905_v6 = vld [vmem:[%s2509_s8] sm:$0xff]  }
 0xb6d   :  { %1067 = vbcast.lane.b32.xlu1 %v1065_v9, 256  ;;  %1074 = vbcast.lane.b32.xlu0 %v1072_v16, 256 }
 0xb71   :  { %1148 = vrot.lane.b32.xlu0 %v1690_v18, %s1910_s6 }
 0xbd7   :  { %v1047_v23 = vpop.permute.xlu1 %1046  ;;  %v1040_v25 = vpop.permute.xlu0 %1039 }
 0xbd8   :  { %v1077_v28 = vmul.f32 %v1047_v23, %v2334_v32  ;;  %v1076_v29 = vmul.f32 %v1040_v25, %v2120_v10 }
 0xbda   :  { %v1083_v31 = vsel %vm639_vm10, %v1077_v28, 0.0  ;;  %v1082_v0 = vsel %vm639_vm10, %v1076_v29, 0.0 }
 0xbdb   :  { %v1054_v17 = vpop.permute.xlu1 %1053  ;;  %v1061_v33 = vpop.permute.xlu0 %1060  ;;  %v1084_v36 = vadd.f32 %v1083_v31, %v1082_v0 }
 0xbdc   :  { %v1078_v34 = vmul.f32 %v1054_v17, %v2122_v11  ;;  %v1079_v35 = vmul.f32 %v1061_v33, %v2193_v21 }
 0xbde   :  { %v1085_v44 = vsel %vm639_vm10, %v1078_v34, 0.0  ;;  %v1087_v32 = vsel %vm639_vm10, %v1079_v35, 0.0 }
 0xbdf   :  { %v1086_v2 = vadd.f32 %v1085_v44, %v1084_v36  ;;  %v1068_v46 = vpop.permute.xlu1 %1067  ;;  %v1075_v48 = vpop.permute.xlu0 %1074 }
 0xbe0   :  { %v1080_v10 = vmul.f32 %v1068_v46, %v2346_v27  ;;  %v1081_v49 = vmul.f32 %v1075_v48, %v2326_v7 }
 0xbe1   :  { %v1088_v50 = vadd.f32 %v1087_v32, %v1086_v2 }
 0xbe2   :  { %v1089_v51 = vsel %vm639_vm10, %v1080_v10, 0.0  ;;  %v1091_v11 = vsel %vm639_vm10, %v1081_v49, 0.0  ;;  %v1572_v49 = vld [vmem:[#allocation3] sm:$0xff] }
 0xbe3   :  { %v1090_v52 = vadd.f32 %v1089_v51, %v1088_v50  ;;  %v1149_v45 = vpop.permute.xlu0 %1148  ;;  %v1573_v50 = vld [vmem:[#allocation3 + $0x8] sm:$0xff] }
 0xbe4   :  { %v1151_v58 = vadd.f32 %v1149_v45, %v2306_v53 }
 0xbe5   :  { %v1092_v21 = vadd.f32 %v1091_v11, %v1090_v52  ;;  %v1576_v52 = vpack.c.bf16 %v1573_v50, %v1572_v49 }
 0xbe6   :  { %v1196_v20 = vpack.c.bf16 %v1151_v58, %v1151_v58 }
 0xbe7   :  { %v1093_v62 = vpack.c.bf16 %v1092_v21, %v1092_v21 }
 0xbe9   :  { %1095 = vrot.lane.b32.xlu1 %v1093_v62, %s1907_s15 }
 0xbed   :  { %1198 = vrot.lane.b32.xlu1 %v1196_v20, %s1907_s15 }
 0xc5b   :  { %v1096_v40 = vpop.permute.xlu1 %1095 }
 0xc5c   :  { %1814 = vmatmul.mubr.msk.bf16.vlgmr.msra.gmra.mxu0 %vm124_vm0, %v1096_v40 }
 0xc5d   :  { %1826 = vmatpush3.bf16.msra.mxu0 %v2042_v14  ;;  %1829 = vmatprep.mubr.msk.bf16.mxu0 %vm1908_vm1, %v1906_v1 }
 0xc5e   :  { %1827 = vmatprep.subr.bf16.mxu0 %v1906_v1 }
 0xc5f   :  { %v1199_v53 = vpop.permute.xlu1 %1198 }
 0xc61   :  { %1828 = vmatpush3.bf16.msra.mxu0 %v2050_v15 }
 0xc62   :  { %1841 = vmatprep.subr.bf16.mxu0 %v1906_v1 }
 0xc64   :  { %1830 = vmatmul.mubr.msk.bf16.vlgmr.msra.gmra.mxu0 %vm124_vm0, %v1199_v53 }
 0xc65   :  { %1842 = vmatpush3.bf16.msra.mxu0 %v2246_v4  ;;  %1845 = vmatprep.mubr.msk.bf16.mxu0 %vm1908_vm1, %v1906_v1  ;;  %v1904_v4 = vld [vmem:[%s2509_s8 + $0x8] sm:$0xff]  }
 0xc66   :  { %1843 = vmatprep.subr.bf16.mxu0 %v1906_v1 }
 0xc69   :  { %1844 = vmatpush3.bf16.msra.mxu0 %v2252_v5 }
 0xd1c   :  { %v1134_v14 = vpop.f32.mrf.mxu0 }
 0xd1d   :  { %v1135_v7 = vadd.f32 %v2290_v55, %v1134_v14 }
 0xd1e   :  { %v1815_v27 = vpop.f32.mrf.mxu0 }
 0xd1f   :  { %1141 = vst.msk [vmem:[#allocation3 + $0x10] sm:$0xff] %vm124_vm0, %v1135_v7  ;;  %v1152_v15 = vpack.c.bf16 %v1135_v7, %v1135_v7  ;;  %v1330_v7 = vmul.f32 3.0, %v2149_v37 }
 0xd20   :  { %v1137_v19 = vpop.f32.mrf.mxu0 }
 0xd21   :  { %1822 = vmatmul.mubr.msk.bf16.vlgmr.msra.gmra.mxu1 %vm124_vm0, %v1152_v15  ;;  %v1348_v27 = vrot.slane %v1330_v7, %v2111_v57  ;;  %v1333_v15 = vmul.f32 2.0, %v2152_v38 }
 0xd22   :  { %v1816_v3 = vpop.f32.mrf.mxu0  ;;  %1834 = vmatpush3.bf16.msra.mxu1 %v1904_v4  ;;  %1837 = vmatprep.mubr.msk.bf16.mxu1 %vm1908_vm1, %v1906_v1 }
 0xd23   :  { %1835 = vmatprep.subr.bf16.mxu1 %v1906_v1  ;;  %v1360_v3 = vrot.slane %v1333_v15, %v2111_v57 }
 0xd24   :  { %v1237_v5 = vpop.f32.mrf.mxu0 }
 0xd25   :  { %v1238_v8 = vadd.f32 %v2063_v24, %v1237_v5 }
 0xd26   :  { %v1831_v63 = vpop.f32.mrf.mxu0  ;;  %1836 = vmatpush3.bf16.msra.mxu1 %v1905_v6  ;;  %v1364_v6 = vrot.slane %v2178_v61, %v2111_v57 }
 0xd27   :  { %1251 = vrot.lane.b32.xlu0 %v1238_v8, %s1909_s17 }
 0xd28   :  { %v1240_v9 = vpop.f32.mrf.mxu0 }
 0xd2a   :  { %v1832_v16 = vpop.f32.mrf.mxu0 }
 0xd99   :  { %v1252_v33 = vpop.permute.xlu0 %1251 }
 0xde1   :  { %v1190_v18 = vpop.f32.mrf.mxu1 }
 0xde2   :  { %v1191_v23 = vadd.f32 %v2070_v30, %v1190_v18 }
 0xde3   :  { %v1823_v25 = vpop.f32.mrf.mxu1 }
 0xde4   :  { %v1243_v28 = vadd.f32 %v1238_v8, %v1191_v23  ;;  %v2439_v8 = vadd.f32 %v1360_v3, %v2343_v47 }
 0xde5   :  { %v1193_v29 = vpop.f32.mrf.mxu1 }
 0xde6   :  { %v1693_v1 = vmul.f32 -1.442695, %v1243_v28 }
 0xde7   :  { %v1824_v31 = vpop.f32.mrf.mxu1 }
 0xde8   :  { %1894 = vpow2.f32 %v1693_v1 }
 0xdf5   :  { %v1895_v24 = vpop.eup %1894 }
 0xdf6   :  { %v1247_v0 = vadd.f32 1.0, %v1895_v24 }
 0xdf8   :  { %1896 = vrcp.f32 %v1247_v0 }
 0xe05   :  { %v1897_v17 = vpop.eup %1896 }
 0xe06   :  { %v1254_v34 = vmul.f32 %v1897_v17, %v1252_v33  ;;  %v1261_v30 = vsub.f32 1.0, %v1897_v17  ;;  %v1267_v46 = vmul.f32 %v1897_v17, %v1151_v58 }
 0xe08   :  { %1256 = vrot.lane.b32.xlu1 %v1254_v34, %s1909_s17 }
 0xe7a   :  { %v1257_v35 = vpop.permute.xlu1 %1256 }
 0xe7b   :  { %v1259_v36 = vadd.f32 %v1257_v35, %v1191_v23 }
 0xe7d   :  { %1898 = vtanh.f32 %v1259_v36 }
 0xe8a   :  { %v1899_v44 = vpop.eup %1898 }
 0xe8b   :  { %1263 = vrot.lane.b32.xlu0 %v1899_v44, %s1907_s15 }
 0xefd   :  { %v1264_v2 = vpop.permute.xlu0 %1263 }
 0xefe   :  { %v1266_v48 = vmul.f32 %v1264_v2, %v1261_v30 }
 0xf00   :  { %v1268_v32 = vadd.f32 %v1267_v46, %v1266_v48 }
 0xf02   :  { %v1269_v10 = vpack.c.bf16 %v1268_v32, %v1268_v32 }
 0xf04   :  { %1271 = vrot.lane.b32.xlu1 %v1269_v10, %s1907_s15 }
 0xf76   :  { %v1272_v51 = vpop.permute.xlu1 %1271 }
 0xf77   :  { %1838 = vmatmul.mubr.msk.bf16.vlgmr.msra.gmra.mxu1 %vm124_vm0, %v1272_v51 }
 0xf78   :  { %1853 = vmatprep.mubr.msk.bf16.mxu1 %vm124_vm0, %v1576_v52 }
0x1037   :  { %v1310_v11 = vpop.f32.mrf.mxu1 }
0x1038   :  { %v1311_v45 = vadd.f32 %v2090_v39, %v1310_v11  ;;  %v2431_v39 = vadd.f32 %v1348_v27, %v2156_v42 }
0x1039   :  { %v1839_v21 = vpop.f32.mrf.mxu1 }
0x103a   :  { %1317 = vrot.lane.b32.xlu0 %v1311_v45, %s1907_s15  ;;  %v1377_v58 = vmul.f32 %v2124_v12, %v1311_v45  ;;  %v1380_v40 = vmul.f32 %v2195_v22, %v1311_v45  ;;  %v1378_v19 = vmul.f32 %v2431_v39, %v1311_v45  ;;  %v1379_v5 = vmul.f32 %v2126_v13, %v1311_v45 }
0x103b   :  { %v1313_v62 = vpop.f32.mrf.mxu1  ;;  %v1381_v63 = vmul.f32 %v2439_v8, %v1311_v45 }
0x103c   :  { %v1383_v20 = vsel %vm124_vm0, %v1377_v58, 0.0  ;;  %v1392_v14 = vsel %vm124_vm0, %v1380_v40, 0.0  ;;  %v1386_v4 = vsel %vm124_vm0, %v1378_v19, 0.0  ;;  %v1389_v37 = vsel %vm124_vm0, %v1379_v5, 0.0 }
0x103d   :  { %1384 = vadd.xlane.f32.xlu1 %v1383_v20  ;;  %v1840_v53 = vpop.f32.mrf.mxu1  ;;  %v1395_v42 = vsel %vm124_vm0, %v1381_v63, 0.0 }
0x1041   :  { %1393 = vadd.xlane.f32.xlu1 %v1392_v14 }
0x1059   :  { %1387 = vadd.xlane.f32.xlu0 %v1386_v4 }
0x105d   :  { %1390 = vadd.xlane.f32.xlu0 %v1389_v37 }
0x1061   :  { %1396 = vadd.xlane.f32.xlu0 %v1395_v42 }
0x10ac   :  { %v1318_v38 = vpop.permute.xlu0 %1317 }
0x10ad   :  { %1321 = vst.msk [vmem:[#allocation2 + $0x28] sm:$0xff] %vm93_vm2, %v1318_v38 }
0x10b4   :  { %v1328_v9 = vld [vmem:[#allocation2 + $0x28] sm:$0xff] }
0x10b5   :  { %v2447_v16 = vadd.f32 %v1364_v6, %v1328_v9 }
0x10b7   :  { %v1382_v47 = vmul.f32 %v2447_v16, %v1311_v45 }
0x10b9   :  { %v1398_v18 = vsel %vm124_vm0, %v1382_v47, 0.0 }
0x10ba   :  { %1399 = vadd.xlane.f32.xlu1 %v1398_v18 }
0x10c6   :  { %v1385_v28 = vpop.xlane.xlu1 %1384 }
0x10c7   :  { %v1401_v31 = vmul.f32 0.17677669, %v1385_v28 }
0x10c9   :  { %v1417_v34 = vrot.slane %v1401_v31, %v2203_v41 }
0x10ca   :  { %v1394_v0 = vpop.xlane.xlu1 %1393 }
0x10cb   :  { %v1404_v35 = vmul.f32 0.17677669, %v1394_v0 }
0x10cd   :  { %v1429_v46 = vrot.slane %v1404_v35, %v2203_v41 }
0x10e2   :  { %v1388_v23 = vpop.xlane.xlu0 %1387 }
0x10e3   :  { %v1402_v29 = vmul.f32 0.17677669, %v1388_v23 }
0x10e5   :  { %v1421_v17 = vrot.slane %v1402_v29, %v2203_v41 }
0x10e6   :  { %v1391_v25 = vpop.xlane.xlu0 %1390 }
0x10e7   :  { %v1403_v1 = vmul.f32 0.17677669, %v1391_v25  ;;  %v1438_v36 = vsel %vm559_vm3, %v1421_v17, %v1417_v34 }
0x10e9   :  { %v1425_v61 = vrot.slane %v1403_v1, %v2203_v41 }
0x10ea   :  { %v1397_v24 = vpop.xlane.xlu0 %1396 }
0x10eb   :  { %v1405_v33 = vmul.f32 0.17677669, %v1397_v24  ;;  %v1439_v44 = vsel %vm561_vm4, %v1425_v61, %v1438_v36  ;;  %v1872_v36 = vld [vmem:[%s2521_s12 + $0x8] sm:$0xff]  }
0x10ec   :  { %v1440_v32 = vsel %vm563_vm5, %v1429_v46, %v1439_v44  ;;  %1849 = vmatprep.subr.bf16.mxu1 %v1872_v36 }
0x10ed   :  { %v1433_v30 = vrot.slane %v1405_v33, %v2203_v41  ;;  %1850 = vmatpush3.bf16.msra.mxu1 %v1872_v36 }
0x10ef   :  { %v1441_v49 = vsel %vm565_vm6, %v1433_v30, %v1440_v32 }
0x1143   :  { %v1400_v2 = vpop.xlane.xlu1 %1399 }
0x1144   :  { %v1406_v48 = vmul.f32 0.17677669, %v1400_v2 }
0x1146   :  { %v1437_v10 = vrot.slane %v1406_v48, %v2203_v41  ;;  %v1574_v48 = vld [vmem:[#allocation3 + $0x10] sm:$0xff] }
0x1148   :  { %v1442_v50 = vsel %vm567_vm7, %v1437_v10, %v1441_v49  ;;  %v1696_v49 = vld [vmem:[%s2522_s13] ss:$0 sm:$0xff] }
0x1149   :  { %v1444_v51 = vsel %vm1407_vm12, %v1442_v50, -1e+30 }
0x114a   :  { %v1445_v52 = vsel %vm571_vm9, %v1444_v51, -inf }
0x114b   :  { %v1446_v11 = vrot.slane %v1445_v52, 4 }
0x114d   :  { %v1447_v45 = vmax.f32 %v1445_v52, %v1446_v11 }
0x114f   :  { %v1448_v21 = vrot.slane %v1447_v45, 2 }
0x1151   :  { %v1449_v58 = vmax.f32 %v1447_v45, %v1448_v21 }
0x1153   :  { %v1450_v62 = vrot.slane %v1449_v58, 1 }
0x1155   :  { %v1451_v20 = vmax.f32 %v1449_v58, %v1450_v62 }
0x1157   :  { %v1452_v40 = vsub.f32 %v1444_v51, %v1451_v20 }
0x1159   :  { %v1453_v53 = vmul.f32 1.442695, %v1452_v40 }
0x115b   :  { %1900 = vpow2.f32 %v1453_v53 }
0x1168   :  { %v1901_v14 = vpop.eup %1900 }
0x1169   :  { %v1455_v43 = vsel %vm571_vm9, %v1901_v14, 0.0 }
0x116a   :  { %v1456_v41 = vrot.slane %v1455_v43, 4 }
0x116c   :  { %v1457_v7 = vadd.f32 %v1456_v41, %v1455_v43 }
0x116e   :  { %v1458_v27 = vrot.slane %v1457_v7, 2 }
0x1170   :  { %v1459_v15 = vadd.f32 %v1458_v27, %v1457_v7 }
0x1172   :  { %v1460_v19 = vrot.slane %v1459_v15, 1 }
0x1174   :  { %v1461_v3 = vadd.f32 %v1460_v19, %v1459_v15 }
0x1176   :  { %1902 = vrcp.f32 %v1461_v3 }
0x1183   :  { %v1903_v4 = vpop.eup %1902 }
0x1184   :  { %v1463_v5 = vmul.f32 %v1903_v4, %v1901_v14 }
0x1186   :  { %v1474_v37 = vrot.slane %v1463_v5, %v2220_v26  ;;  %v1467_v63 = vrot.slane %v1463_v5, %v2111_v57  ;;  %v1481_v42 = vrot.slane %v1463_v5, %v2225_v54  ;;  %v1488_v38 = vrot.slane %v1463_v5, %v2228_v56 }
0x1187   :  { %v1495_v6 = vrot.slane %v1463_v5, %v2233_v59  ;;  %v1502_v9 = vrot.slane %v1463_v5, %v2236_v60 }
0x1188   :  { %1476 = vbcast.lane.b32.xlu1 %v1474_v37, 256  ;;  %1469 = vbcast.lane.b32.xlu0 %v1467_v63, 256 }
0x118c   :  { %1483 = vbcast.lane.b32.xlu1 %v1481_v42, 256  ;;  %1490 = vbcast.lane.b32.xlu0 %v1488_v38, 256 }
0x1190   :  { %1497 = vbcast.lane.b32.xlu1 %v1495_v6, 256  ;;  %1504 = vbcast.lane.b32.xlu0 %v1502_v9, 256 }
0x11fa   :  { %v1477_v47 = vpop.permute.xlu1 %1476  ;;  %v1470_v18 = vpop.permute.xlu0 %1469 }
0x11fb   :  { %v1507_v26 = vmul.f32 %v1477_v47, %v2431_v39  ;;  %v1506_v57 = vmul.f32 %v1470_v18, %v2124_v12 }
0x11fd   :  { %v1513_v23 = vsel %vm639_vm10, %v1507_v26, 0.0  ;;  %v1512_v54 = vsel %vm639_vm10, %v1506_v57, 0.0 }
0x11fe   :  { %v1484_v25 = vpop.permute.xlu1 %1483  ;;  %v1491_v56 = vpop.permute.xlu0 %1490  ;;  %v1514_v29 = vadd.f32 %v1513_v23, %v1512_v54 }
0x11ff   :  { %v1508_v28 = vmul.f32 %v1484_v25, %v2126_v13  ;;  %v1509_v59 = vmul.f32 %v1491_v56, %v2195_v22 }
0x1201   :  { %v1515_v60 = vsel %vm639_vm10, %v1508_v28, 0.0  ;;  %v1517_v39 = vsel %vm639_vm10, %v1509_v59, 0.0 }
0x1202   :  { %v1516_v1 = vadd.f32 %v1515_v60, %v1514_v29  ;;  %v1498_v31 = vpop.permute.xlu1 %1497  ;;  %v1505_v24 = vpop.permute.xlu0 %1504 }
0x1203   :  { %v1510_v12 = vmul.f32 %v1498_v31, %v2439_v8  ;;  %v1511_v0 = vmul.f32 %v1505_v24, %v2447_v16  ;;  %v1873_v8 = vld [vmem:[%s2521_s12] sm:$0xff]  }
0x1204   :  { %v1518_v17 = vadd.f32 %v1517_v39, %v1516_v1  ;;  %1851 = vmatprep.subr.bf16.mxu1 %v1873_v8 }
0x1205   :  { %v1519_v61 = vsel %vm639_vm10, %v1510_v12, 0.0  ;;  %v1521_v13 = vsel %vm639_vm10, %v1511_v0, 0.0  ;;  %1852 = vmatpush3.bf16.msra.mxu1 %v1873_v8 }
0x1206   :  { %v1520_v33 = vadd.f32 %v1519_v61, %v1518_v17 }
0x1208   :  { %v1522_v34 = vadd.f32 %v1521_v13, %v1520_v33 }
0x120a   :  { %v1523_v22 = vpack.c.bf16 %v1522_v34, %v1522_v34 }
0x120c   :  { %1525 = vrot.lane.b32.xlu1 %v1523_v22, %s1907_s15 }
0x127e   :  { %v1526_v35 = vpop.permute.xlu1 %1525 }
0x127f   :  { %1846 = vmatmul.mubr.msk.bf16.vlgmr.msra.gmra.mxu0 %vm124_vm0, %v1526_v35 }
0x133f   :  { %v1564_v16 = vpop.f32.mrf.mxu0 }
0x1340   :  { %v1565_v44 = vadd.f32 %v2290_v55, %v1564_v16 }
0x1341   :  { %v1847_v30 = vpop.f32.mrf.mxu0 }
0x1342   :  { %1571 = vst.msk [vmem:[#allocation3 + $0x18] sm:$0xff] %vm124_vm0, %v1565_v44 }
0x1343   :  { %v1567_v2 = vpop.f32.mrf.mxu0 }
0x1345   :  { %v1848_v46 = vpop.f32.mrf.mxu0 }
0x1349   :  { %v1575_v32 = vld [vmem:[#allocation3 + $0x18] sm:$0xff] }
0x134a   :  { %v1577_v10 = vpack.c.bf16 %v1575_v32, %v1574_v48 }
0x134c   :  { %1854 = vmatmul.mubr.msk.bf16.vlgmr.msra.gmra.mxu1 %vm124_vm0, %v1577_v10 }
0x140c   :  { %v1855_v50 = vpop.f32.mrf.mxu1 }
0x140d   :  { %v1650_v51 = vadd.f32 %v1855_v50, %v1696_v49 }
0x140e   :  { %v1641_v52 = vpop.f32.mrf.mxu1 }
0x140f   :  { %1658 = vst [vmem:[%s2523_s14 + $0x10] sm:$0xff] %v1650_v51  ;;  %v1642_v55 = vadd.f32 %v1696_v49, %v1641_v52 }
0x1410   :  { %v1856_v11 = vpop.f32.mrf.mxu1 }
0x1411   :  { %1656 = vst [vmem:[%s2523_s14] sm:$0xff] %v1642_v55  ;;  %v1653_v45 = vadd.f32 %v1856_v11, %v1696_v49 }
0x1412   :  { %v1644_v21 = vpop.f32.mrf.mxu1 }
0x1413   :  { %1659 = vst [vmem:[%s2523_s14 + $0x18] sm:$0xff] %v1653_v45  ;;  %v1645_v58 = vadd.f32 %v1696_v49, %v1644_v21 }
0x1415   :  { %1657 = vst [vmem:[%s2523_s14 + $0x8] sm:$0xff] %v1645_v58 }

</bundles_post_ra>
